<compile_context>
chip_gen: v5e
topology: v5e:2x2
jax: 0.10.0
libtpu: 0.0.40
codegen_flags: <defaults>
</compile_context>

<pallas_src>
import functools

import jax
import jax.numpy as jnp
from jax.experimental import pallas as pl
from jax.experimental.pallas import tpu as pltpu


# ----------------------------------------------------------------------------
# Packed bias / LayerNorm-parameter table layout (rows of a (16, 3D) array)
# ----------------------------------------------------------------------------
_ROW_SBQKV, _ROW_SBO, _ROW_EBQ, _ROW_EBKV, _ROW_EBO = 0, 1, 2, 3, 4
_ROW_FC1B, _ROW_FC2B = 5, 6
_ROW_LN1G, _ROW_LN1B, _ROW_LN2G, _ROW_LN2B, _ROW_LN3G, _ROW_LN3B = 7, 8, 9, 10, 11, 12
_VEC_ROWS = 16


# ----------------------------------------------------------------------------
# In-kernel helpers (operate on values, not refs)
# ----------------------------------------------------------------------------

def _linear(x, w_ref, bias):
    # x: (R, K) f32, w_ref: (K, N) compute-dtype weight, bias: (1, N) f32.
    return jnp.dot(x.astype(w_ref.dtype), w_ref[...],
                   preferred_element_type=jnp.float32) + bias


def _add_layer_norm(x, res, gamma, beta, eps):
    # LayerNorm(res + x) over last dim (PyTorch eps=1e-5 default).
    y = x + res
    mu = jnp.mean(y, axis=-1, keepdims=True)
    var = jnp.mean(jnp.square(y - mu), axis=-1, keepdims=True)
    return (y - mu) * jax.lax.rsqrt(var + eps) * gamma + beta


def _split_heads(x, B, T, H, dh):
    # x: (B*T, H*dh) row-major in (b, t) -> (B*H, T, dh) for head-batched matmuls.
    parts = []
    for b in range(B):
        rows = x[b * T:(b + 1) * T]                       # (T, H*dh) sublane slice
        for h in range(H):
            parts.append(rows[:, h * dh:(h + 1) * dh])    # (T, dh)
    return jnp.stack(parts, axis=0)                       # (B*H, T, dh)


def _merge_heads(x, B, T, H, dh):
    # x: (B*H, T, dh) -> lane-dense (B*T, H*dh) slab.
    rows = []
    for b in range(B):
        rows.append(jnp.concatenate([x[b * H + h] for h in range(H)], axis=-1))
    return jnp.concatenate(rows, axis=0)                  # (B*T, D)


def _mha_batched(q, k, v, bias, B, H, Tq, Tk, dh, cdt, need_probs):
    # q: (B*Tq, D), k/v: (B*Tk, D) f32 slabs; bias: (B*H, 1, Tk) additive
    # (-1e9 on padded keys; differs from a -inf mask only if an entire key row
    #  were padded, which the caller never does).
    scale = dh ** -0.5
    qh = _split_heads(q * scale, B, Tq, H, dh).astype(cdt)    # (B*H, Tq, dh)
    kh = _split_heads(k, B, Tk, H, dh).astype(cdt)            # (B*H, Tk, dh)
    vh = _split_heads(v, B, Tk, H, dh).astype(cdt)            # (B*H, Tk, dh)

    # Single head-batched score matmul (no per-head MXU push/pop).
    s = jnp.einsum('bqd,bkd->bqk', qh, kh,
                   preferred_element_type=jnp.float32) + bias  # (B*H, Tq, Tk)
    s = s - jnp.max(s, axis=-1, keepdims=True)
    e = jnp.exp(s)
    # approx reciprocal runs on the EUP slot; ~2^-12 rel. error vs exact f32.
    p = e * pl.reciprocal(jnp.sum(e, axis=-1, keepdims=True), approx=True)

    o = jnp.einsum('bqk,bkd->bqd', p.astype(cdt), vh,
                   preferred_element_type=jnp.float32)         # (B*H, Tq, dh)
    attn = _merge_heads(o, B, Tq, H, dh)                       # (B*Tq, D)

    if not need_probs:
        return attn, None
    # Head-mean probabilities (what torch MultiheadAttention returns by default).
    wmean = jnp.stack(
        [sum(p[b * H + h] for h in range(H)) * (1.0 / H) for b in range(B)],
        axis=0)                                                # (B, Tq, Tk)
    return attn, wmean


# ----------------------------------------------------------------------------
# Fused decoder-layer kernels (single invocation, batch folded into rows)
# ----------------------------------------------------------------------------

def _decoder_layer_enc_kernel(
        x_ref, enc_ref, sbias_ref, ebias_ref,
        swqkv_ref, swo_ref, ewq_ref, ewkv_ref, ewo_ref,
        fc1w_ref, fc2w_ref, vec_ref,
        out_ref, wgt_ref=None, *,
        B, T, S, num_heads, eps, need_weights):
    D = out_ref.shape[-1]
    dh = D // num_heads
    cdt = swqkv_ref.dtype
    x = x_ref[...]                                        # (B*T, D)
    enc = enc_ref[...]                                    # (B*S, D)

    def row(r, w):
        return vec_ref[r:r + 1, :w]                       # (1, w) static slice

    # --- self attention (fused QKV projection on the full (B*T, D) slab) -----
    qkv = _linear(x, swqkv_ref, row(_ROW_SBQKV, 3 * D))
    h, _ = _mha_batched(qkv[:, :D], qkv[:, D:2 * D], qkv[:, 2 * D:],
                        sbias_ref[...], B, num_heads, T, T, dh, cdt,
                        need_probs=False)
    h = _linear(h, swo_ref, row(_ROW_SBO, D))
    # dropout=0.0 -> identity
    x = _add_layer_norm(h, x, row(_ROW_LN1G, D), row(_ROW_LN1B, D), eps)

    # --- encoder attention (fused KV projection) ------------------------------
    q = _linear(x, ewq_ref, row(_ROW_EBQ, D))
    kv = _linear(enc, ewkv_ref, row(_ROW_EBKV, 2 * D))
    h, w = _mha_batched(q, kv[:, :D], kv[:, D:], ebias_ref[...],
                        B, num_heads, T, S, dh, cdt, need_probs=need_weights)
    h = _linear(h, ewo_ref, row(_ROW_EBO, D))
    x = _add_layer_norm(h, x, row(_ROW_LN2G, D), row(_ROW_LN2B, D), eps)

    # --- feed forward ----------------------------------------------------------
    h = jnp.maximum(_linear(x, fc1w_ref, row(_ROW_FC1B, 2 * D)), 0.0)
    h = _linear(h, fc2w_ref, row(_ROW_FC2B, D))
    x = _add_layer_norm(h, x, row(_ROW_LN3G, D), row(_ROW_LN3B, D), eps)

    out_ref[...] = x.astype(out_ref.dtype)
    if need_weights:
        wgt_ref[...] = w


def _decoder_layer_self_kernel(
        x_ref, sbias_ref,
        swqkv_ref, swo_ref, fc1w_ref, fc2w_ref, vec_ref,
        out_ref, wgt_ref=None, *,
        B, T, num_heads, eps, need_weights):
    # encoder_out=None path: self-attn block + FFN block only.
    D = out_ref.shape[-1]
    dh = D // num_heads
    cdt = swqkv_ref.dtype
    x = x_ref[...]

    def row(r, w):
        return vec_ref[r:r + 1, :w]

    qkv = _linear(x, swqkv_ref, row(_ROW_SBQKV, 3 * D))
    h, w = _mha_batched(qkv[:, :D], qkv[:, D:2 * D], qkv[:, 2 * D:],
                        sbias_ref[...], B, num_heads, T, T, dh, cdt,
                        need_probs=need_weights)
    h = _linear(h, swo_ref, row(_ROW_SBO, D))
    x = _add_layer_norm(h, x, row(_ROW_LN1G, D), row(_ROW_LN1B, D), eps)

    h = jnp.maximum(_linear(x, fc1w_ref, row(_ROW_FC1B, 2 * D)), 0.0)
    h = _linear(h, fc2w_ref, row(_ROW_FC2B, D))
    x = _add_layer_norm(h, x, row(_ROW_LN3G, D), row(_ROW_LN3B, D), eps)

    out_ref[...] = x.astype(out_ref.dtype)
    if need_weights:
        wgt_ref[...] = w


# ----------------------------------------------------------------------------
# pallas_call wrappers
# ----------------------------------------------------------------------------

_VMEM_SPEC = pl.BlockSpec(memory_space=pltpu.MemorySpace.VMEM)   # whole array in VMEM


def _pack_vecs(p, D):
    # Collapse all tiny bias / LN vectors into one (16, 3D) table (one input).
    tbl = jnp.zeros((_VEC_ROWS, 3 * D), jnp.float32)

    def put(t, r, v):
        return t.at[r, :v.shape[0]].set(v.astype(jnp.float32))

    sa = p["self_attn"]
    tbl = put(tbl, _ROW_SBQKV, sa["bqkv"])
    tbl = put(tbl, _ROW_SBO, sa["bo"])
    if "enc_attn" in p:
        ea = p["enc_attn"]
        tbl = put(tbl, _ROW_EBQ, ea["bq"])
        tbl = put(tbl, _ROW_EBKV, ea["bkv"])
        tbl = put(tbl, _ROW_EBO, ea["bo"])
        tbl = put(tbl, _ROW_LN2G, p["ln2_g"])
        tbl = put(tbl, _ROW_LN2B, p["ln2_b"])
    tbl = put(tbl, _ROW_FC1B, p["fc1_b"])
    tbl = put(tbl, _ROW_FC2B, p["fc2_b"])
    tbl = put(tbl, _ROW_LN1G, p["ln1_g"])
    tbl = put(tbl, _ROW_LN1B, p["ln1_b"])
    tbl = put(tbl, _ROW_LN3G, p["ln3_g"])
    tbl = put(tbl, _ROW_LN3B, p["ln3_b"])
    return tbl


def _cost_estimate(args, B, T, S, D, H, has_enc, need_weights):
    dh = D // H
    mm = lambda m, k, n: 2 * m * k * n
    flops = (mm(B * T, D, 3 * D) + mm(B * T, D, D)          # self QKV + out proj
             + 2 * mm(B * H * T, dh, T)                     # self scores + PV
             + mm(B * T, D, 2 * D) + mm(B * T, 2 * D, D))   # FFN
    transcendentals = B * H * T * T
    if has_enc:
        flops += (mm(B * T, D, D) + mm(B * S, D, 2 * D) + mm(B * T, D, D)
                  + 2 * mm(B * H * T, dh, S))
        transcendentals += B * H * T * S
    out_bytes = 4 * B * T * D
    if need_weights:
        out_bytes += 4 * B * T * (S if has_enc else T)
    bytes_accessed = sum(int(a.size) * a.dtype.itemsize for a in args) + out_bytes
    return pl.CostEstimate(flops=flops, transcendentals=transcendentals,
                           bytes_accessed=bytes_accessed)


def _fused_decoder_enc(xs, encs, sbias, ebias, p, num_heads, B, T, S, D,
                       compute_dtype, need_weights, eps=1e-5):
    sa, ea = p["self_attn"], p["enc_attn"]
    cdt = compute_dtype
    args = [xs, encs, sbias, ebias,
            sa["wqkv"].astype(cdt), sa["wo"].astype(cdt),
            ea["wq"].astype(cdt), ea["wkv"].astype(cdt), ea["wo"].astype(cdt),
            p["fc1_w"].astype(cdt), p["fc2_w"].astype(cdt),
            _pack_vecs(p, D)]
    ce = _cost_estimate(args, B, T, S, D, num_heads, True, need_weights)
    kern = functools.partial(_decoder_layer_enc_kernel, B=B, T=T, S=S,
                             num_heads=num_heads, eps=eps,
                             need_weights=need_weights)
    if need_weights:
        return pl.pallas_call(
            kern,
            out_shape=(jax.ShapeDtypeStruct((B * T, D), jnp.float32),
                       jax.ShapeDtypeStruct((B, T, S), jnp.float32)),
            in_specs=[_VMEM_SPEC] * len(args),
            out_specs=(_VMEM_SPEC, _VMEM_SPEC),
            cost_estimate=ce,
        )(*args)
    out = pl.pallas_call(
        kern,
        out_shape=jax.ShapeDtypeStruct((B * T, D), jnp.float32),
        in_specs=[_VMEM_SPEC] * len(args),
        out_specs=_VMEM_SPEC,
        cost_estimate=ce,
    )(*args)
    return out, None


def _fused_decoder_self(xs, sbias, p, num_heads, B, T, D,
                        compute_dtype, need_weights, eps=1e-5):
    sa = p["self_attn"]
    cdt = compute_dtype
    args = [xs, sbias,
            sa["wqkv"].astype(cdt), sa["wo"].astype(cdt),
            p["fc1_w"].astype(cdt), p["fc2_w"].astype(cdt),
            _pack_vecs(p, D)]
    ce = _cost_estimate(args, B, T, 0, D, num_heads, False, need_weights)
    kern = functools.partial(_decoder_layer_self_kernel, B=B, T=T,
                             num_heads=num_heads, eps=eps,
                             need_weights=need_weights)
    if need_weights:
        return pl.pallas_call(
            kern,
            out_shape=(jax.ShapeDtypeStruct((B * T, D), jnp.float32),
                       jax.ShapeDtypeStruct((B, T, T), jnp.float32)),
            in_specs=[_VMEM_SPEC] * len(args),
            out_specs=(_VMEM_SPEC, _VMEM_SPEC),
            cost_estimate=ce,
        )(*args)
    out = pl.pallas_call(
        kern,
        out_shape=jax.ShapeDtypeStruct((B * T, D), jnp.float32),
        in_specs=[_VMEM_SPEC] * len(args),
        out_specs=_VMEM_SPEC,
        cost_estimate=ce,
    )(*args)
    return out, None


# ----------------------------------------------------------------------------
# Public forward (seq-first (T, B, D) interface, as in the PyTorch module)
# ----------------------------------------------------------------------------

def _pad_bias(mask, B, Tk, H):
    # (B, Tk) bool, True = padded  ->  (B*H, 1, Tk) additive bias, row order (b, h).
    if mask is None:
        return jnp.zeros((B * H, 1, Tk), jnp.float32)
    b = jnp.where(mask, -1e9, 0.0).astype(jnp.float32)[:, None, :]   # (B, 1, Tk)
    return jnp.repeat(b, H, axis=0)


def transformer_decoder_layer(x, mask, encoder_out, encoder_mask, params, num_heads,
                              need_weights=True, compute_dtype=jnp.bfloat16):
    T, B, D = x.shape
    H = num_heads
    # One small (T,B,D)->(B*T,D) copy each way; production fix is a batch-major
    # interface end-to-end (see TODO at top).
    xs = jnp.transpose(x, (1, 0, 2)).reshape(B * T, D)
    sbias = _pad_bias(mask, B, T, H)

    if encoder_out is not None:
        S = encoder_out.shape[0]
        encs = jnp.transpose(encoder_out, (1, 0, 2)).reshape(B * S, D)
        ebias = _pad_bias(encoder_mask, B, S, H)
        out_slab, weight = _fused_decoder_enc(xs, encs, sbias, ebias, params, H,
                                              B, T, S, D, compute_dtype, need_weights)
    else:
        out_slab, weight = _fused_decoder_self(xs, sbias, params, H, B, T, D,
                                               compute_dtype, need_weights)

    out = jnp.transpose(out_slab.reshape(B, T, D), (1, 0, 2))
    return out, weight


# ----------------------------------------------------------------------------
# Deterministic parameter construction
# ----------------------------------------------------------------------------

def init_params(key, d_model):
    D = d_model

    def lin(k, din, dout):
        return 0.05 * jax.random.normal(k, (din, dout), jnp.float32)

    keys = jax.random.split(key, 8)
    return {
        "self_attn": {
            "wqkv": lin(keys[0], D, 3 * D), "bqkv": jnp.zeros((3 * D,), jnp.float32),
            "wo": lin(keys[1], D, D), "bo": jnp.zeros((D,), jnp.float32),
        },
        "enc_attn": {
            "wq": lin(keys[2], D, D), "bq": jnp.zeros((D,), jnp.float32),
            "wkv": lin(keys[3], D, 2 * D), "bkv": jnp.zeros((2 * D,), jnp.float32),
            "wo": lin(keys[4], D, D), "bo": jnp.zeros((D,), jnp.float32),
        },
        "fc1_w": lin(keys[5], D, 2 * D), "fc1_b": jnp.zeros((2 * D,), jnp.float32),
        "fc2_w": lin(keys[6], 2 * D, D), "fc2_b": jnp.zeros((D,), jnp.float32),
        "ln1_g": jnp.ones((D,), jnp.float32), "ln1_b": jnp.zeros((D,), jnp.float32),
        "ln2_g": jnp.ones((D,), jnp.float32), "ln2_b": jnp.zeros((D,), jnp.float32),
        "ln3_g": jnp.ones((D,), jnp.float32), "ln3_b": jnp.zeros((D,), jnp.float32),
    }


# ----------------------------------------------------------------------------
# Main
# ----------------------------------------------------------------------------

if __name__ == "__main__":
    D_MODEL = 32
    NUM_HEADS = 4
    T = 8          # target sequence length
    S = 16         # source (encoder) sequence length
    B = 2          # batch

    root = jax.random.PRNGKey(0)
    k_param, k_x, k_enc = jax.random.split(root, 3)

    params = init_params(k_param, D_MODEL)

    # seq-first (T, B, D) inputs; (B, T) padding masks (True = pad)
    x = jax.random.normal(k_x, (T, B, D_MODEL), jnp.float32)
    encoder_out = jax.random.normal(k_enc, (S, B, D_MODEL), jnp.float32)

    # batch 0: no padding; batch 1: pad last 2 target / last 4 source positions
    mask = jnp.stack([jnp.zeros((T,), bool), jnp.arange(T) >= T - 2], axis=0)
    encoder_mask = jnp.stack([jnp.zeros((S,), bool), jnp.arange(S) >= S - 4], axis=0)

    fwd = jax.jit(functools.partial(transformer_decoder_layer, num_heads=NUM_HEADS))

    # Cross-attention path (encoder_out provided) — module's main configuration.
    out, weight = fwd(x, mask, encoder_out, encoder_mask, params)
    out, weight = jax.block_until_ready((out, weight))
    assert out.shape == (T, B, D_MODEL)
    assert weight.shape == (B, T, S)
    assert bool(jnp.all(jnp.isfinite(out))) and bool(jnp.all(jnp.isfinite(weight)))

    # Self-attention-only path (encoder_out=None).
    out2, weight2 = fwd(x, mask, None, None, params)
    out2, weight2 = jax.block_until_ready((out2, weight2))
    assert out2.shape == (T, B, D_MODEL)
    assert weight2.shape == (B, T, T)
    assert bool(jnp.all(jnp.isfinite(out2))) and bool(jnp.all(jnp.isfinite(weight2)))

    # TODO(synk): CosformerAttention / BatchNorm1d variants, dropout>0 training mode,
    # and the self_attn_mask / gauss_weight inputs (all None / unused in the default
    # 'Vanilla'+'LayerNorm'+dropout=0 configuration) are not exercised here.
    print("KERNEL_OK")
</pallas_src>

<mosaic_0001>
module attributes {stable_mosaic.version = 11 : i64} {
  func.func @_decoder_layer_enc_kernel(%arg0: memref<16x32xf32, #tpu.memory_space<vmem>>, %arg1: memref<32x32xf32, #tpu.memory_space<vmem>>, %arg2: memref<8x1x8xf32, #tpu.memory_space<vmem>>, %arg3: memref<8x1x16xf32, #tpu.memory_space<vmem>>, %arg4: memref<32x96xbf16, #tpu.memory_space<vmem>>, %arg5: memref<32x32xbf16, #tpu.memory_space<vmem>>, %arg6: memref<32x32xbf16, #tpu.memory_space<vmem>>, %arg7: memref<32x64xbf16, #tpu.memory_space<vmem>>, %arg8: memref<32x32xbf16, #tpu.memory_space<vmem>>, %arg9: memref<32x64xbf16, #tpu.memory_space<vmem>>, %arg10: memref<64x32xbf16, #tpu.memory_space<vmem>>, %arg11: memref<16x96xf32, #tpu.memory_space<vmem>>, %arg12: memref<16x32xf32, #tpu.memory_space<vmem>>, %arg13: memref<2x8x16xf32, #tpu.memory_space<vmem>>) attributes {dimension_semantics = [], scalar_prefetch = 0 : i64, scratch_operands = 0 : i64, tpu.core_type = #tpu.core_type<tc>} {
    %c0 = arith.constant 0 : index
    %c0_0 = arith.constant 0 : index
    %0 = vector.load %arg0[%c0, %c0_0] : memref<16x32xf32, #tpu.memory_space<vmem>>, vector<16x32xf32>
    %c0_1 = arith.constant 0 : index
    %c0_2 = arith.constant 0 : index
    %1 = vector.load %arg1[%c0_1, %c0_2] : memref<32x32xf32, #tpu.memory_space<vmem>>, vector<32x32xf32>
    %c0_3 = arith.constant 0 : index
    %c0_4 = arith.constant 0 : index
    %2 = vector.load %arg11[%c0_3, %c0_4] : memref<16x96xf32, #tpu.memory_space<vmem>>, vector<1x96xf32>
    %3 = arith.truncf %0 : vector<16x32xf32> to vector<16x32xbf16>
    %c0_5 = arith.constant 0 : index
    %c0_6 = arith.constant 0 : index
    %4 = vector.load %arg4[%c0_5, %c0_6] : memref<32x96xbf16, #tpu.memory_space<vmem>>, vector<32x96xbf16>
    %cst = arith.constant dense<0.000000e+00> : vector<16x96xf32>
    %5 = tpu.matmul %3, %4, %cst {dimension_numbers = #tpu.dot_dimension_numbers<[1], [0], [0], [1], [0, 0, 1, 1], [], []>} : vector<16x32xbf16>, vector<32x96xbf16>, vector<16x96xf32> -> vector<16x96xf32>
    %6 = vector.broadcast %2 : vector<1x96xf32> to vector<16x96xf32>
    %7 = arith.addf %5, %6 : vector<16x96xf32>
    %8 = vector.extract_strided_slice %7 {offsets = [0, 0], sizes = [16, 32], strides = [1, 1]} : vector<16x96xf32> to vector<16x32xf32>
    %9 = vector.extract_strided_slice %7 {offsets = [0, 32], sizes = [16, 32], strides = [1, 1]} : vector<16x96xf32> to vector<16x32xf32>
    %10 = vector.extract_strided_slice %7 {offsets = [0, 64], sizes = [16, 32], strides = [1, 1]} : vector<16x96xf32> to vector<16x32xf32>
    %c0_7 = arith.constant 0 : index
    %c0_8 = arith.constant 0 : index
    %c0_9 = arith.constant 0 : index
    %11 = vector.load %arg2[%c0_7, %c0_8, %c0_9] : memref<8x1x8xf32, #tpu.memory_space<vmem>>, vector<8x1x8xf32>
    %cst_10 = arith.constant 0.353553385 : f32
    %12 = vector.broadcast %cst_10 : f32 to vector<16x32xf32>
    %13 = arith.mulf %8, %12 : vector<16x32xf32>
    %14 = vector.extract_strided_slice %13 {offsets = [0, 0], sizes = [8, 32], strides = [1, 1]} : vector<16x32xf32> to vector<8x32xf32>
    %15 = vector.extract_strided_slice %14 {offsets = [0, 0], sizes = [8, 8], strides = [1, 1]} : vector<8x32xf32> to vector<8x8xf32>
    %16 = vector.extract_strided_slice %14 {offsets = [0, 8], sizes = [8, 8], strides = [1, 1]} : vector<8x32xf32> to vector<8x8xf32>
    %17 = vector.extract_strided_slice %14 {offsets = [0, 16], sizes = [8, 8], strides = [1, 1]} : vector<8x32xf32> to vector<8x8xf32>
    %18 = vector.extract_strided_slice %14 {offsets = [0, 24], sizes = [8, 8], strides = [1, 1]} : vector<8x32xf32> to vector<8x8xf32>
    %19 = vector.extract_strided_slice %13 {offsets = [8, 0], sizes = [8, 32], strides = [1, 1]} : vector<16x32xf32> to vector<8x32xf32>
    %20 = vector.extract_strided_slice %19 {offsets = [0, 0], sizes = [8, 8], strides = [1, 1]} : vector<8x32xf32> to vector<8x8xf32>
    %21 = vector.extract_strided_slice %19 {offsets = [0, 8], sizes = [8, 8], strides = [1, 1]} : vector<8x32xf32> to vector<8x8xf32>
    %22 = vector.extract_strided_slice %19 {offsets = [0, 16], sizes = [8, 8], strides = [1, 1]} : vector<8x32xf32> to vector<8x8xf32>
    %23 = vector.extract_strided_slice %19 {offsets = [0, 24], sizes = [8, 8], strides = [1, 1]} : vector<8x32xf32> to vector<8x8xf32>
    %24 = vector.shape_cast %15 : vector<8x8xf32> to vector<1x8x8xf32>
    %25 = vector.shape_cast %16 : vector<8x8xf32> to vector<1x8x8xf32>
    %26 = vector.shape_cast %17 : vector<8x8xf32> to vector<1x8x8xf32>
    %27 = vector.shape_cast %18 : vector<8x8xf32> to vector<1x8x8xf32>
    %28 = vector.shape_cast %20 : vector<8x8xf32> to vector<1x8x8xf32>
    %29 = vector.shape_cast %21 : vector<8x8xf32> to vector<1x8x8xf32>
    %30 = vector.shape_cast %22 : vector<8x8xf32> to vector<1x8x8xf32>
    %31 = vector.shape_cast %23 : vector<8x8xf32> to vector<1x8x8xf32>
    %32 = tpu.concatenate %24, %25, %26, %27, %28, %29, %30, %31 in 0 : vector<1x8x8xf32>, vector<1x8x8xf32>, vector<1x8x8xf32>, vector<1x8x8xf32>, vector<1x8x8xf32>, vector<1x8x8xf32>, vector<1x8x8xf32>, vector<1x8x8xf32> -> vector<8x8x8xf32>
    %33 = arith.truncf %32 : vector<8x8x8xf32> to vector<8x8x8xbf16>
    %34 = vector.extract_strided_slice %9 {offsets = [0, 0], sizes = [8, 32], strides = [1, 1]} : vector<16x32xf32> to vector<8x32xf32>
    %35 = vector.extract_strided_slice %34 {offsets = [0, 0], sizes = [8, 8], strides = [1, 1]} : vector<8x32xf32> to vector<8x8xf32>
    %36 = vector.extract_strided_slice %34 {offsets = [0, 8], sizes = [8, 8], strides = [1, 1]} : vector<8x32xf32> to vector<8x8xf32>
    %37 = vector.extract_strided_slice %34 {offsets = [0, 16], sizes = [8, 8], strides = [1, 1]} : vector<8x32xf32> to vector<8x8xf32>
    %38 = vector.extract_strided_slice %34 {offsets = [0, 24], sizes = [8, 8], strides = [1, 1]} : vector<8x32xf32> to vector<8x8xf32>
    %39 = vector.extract_strided_slice %9 {offsets = [8, 0], sizes = [8, 32], strides = [1, 1]} : vector<16x32xf32> to vector<8x32xf32>
    %40 = vector.extract_strided_slice %39 {offsets = [0, 0], sizes = [8, 8], strides = [1, 1]} : vector<8x32xf32> to vector<8x8xf32>
    %41 = vector.extract_strided_slice %39 {offsets = [0, 8], sizes = [8, 8], strides = [1, 1]} : vector<8x32xf32> to vector<8x8xf32>
    %42 = vector.extract_strided_slice %39 {offsets = [0, 16], sizes = [8, 8], strides = [1, 1]} : vector<8x32xf32> to vector<8x8xf32>
    %43 = vector.extract_strided_slice %39 {offsets = [0, 24], sizes = [8, 8], strides = [1, 1]} : vector<8x32xf32> to vector<8x8xf32>
    %44 = vector.shape_cast %35 : vector<8x8xf32> to vector<1x8x8xf32>
    %45 = vector.shape_cast %36 : vector<8x8xf32> to vector<1x8x8xf32>
    %46 = vector.shape_cast %37 : vector<8x8xf32> to vector<1x8x8xf32>
    %47 = vector.shape_cast %38 : vector<8x8xf32> to vector<1x8x8xf32>
    %48 = vector.shape_cast %40 : vector<8x8xf32> to vector<1x8x8xf32>
    %49 = vector.shape_cast %41 : vector<8x8xf32> to vector<1x8x8xf32>
    %50 = vector.shape_cast %42 : vector<8x8xf32> to vector<1x8x8xf32>
    %51 = vector.shape_cast %43 : vector<8x8xf32> to vector<1x8x8xf32>
    %52 = tpu.concatenate %44, %45, %46, %47, %48, %49, %50, %51 in 0 : vector<1x8x8xf32>, vector<1x8x8xf32>, vector<1x8x8xf32>, vector<1x8x8xf32>, vector<1x8x8xf32>, vector<1x8x8xf32>, vector<1x8x8xf32>, vector<1x8x8xf32> -> vector<8x8x8xf32>
    %53 = arith.truncf %52 : vector<8x8x8xf32> to vector<8x8x8xbf16>
    %54 = vector.extract_strided_slice %10 {offsets = [0, 0], sizes = [8, 32], strides = [1, 1]} : vector<16x32xf32> to vector<8x32xf32>
    %55 = vector.extract_strided_slice %54 {offsets = [0, 0], sizes = [8, 8], strides = [1, 1]} : vector<8x32xf32> to vector<8x8xf32>
    %56 = vector.extract_strided_slice %54 {offsets = [0, 8], sizes = [8, 8], strides = [1, 1]} : vector<8x32xf32> to vector<8x8xf32>
    %57 = vector.extract_strided_slice %54 {offsets = [0, 16], sizes = [8, 8], strides = [1, 1]} : vector<8x32xf32> to vector<8x8xf32>
    %58 = vector.extract_strided_slice %54 {offsets = [0, 24], sizes = [8, 8], strides = [1, 1]} : vector<8x32xf32> to vector<8x8xf32>
    %59 = vector.extract_strided_slice %10 {offsets = [8, 0], sizes = [8, 32], strides = [1, 1]} : vector<16x32xf32> to vector<8x32xf32>
    %60 = vector.extract_strided_slice %59 {offsets = [0, 0], sizes = [8, 8], strides = [1, 1]} : vector<8x32xf32> to vector<8x8xf32>
    %61 = vector.extract_strided_slice %59 {offsets = [0, 8], sizes = [8, 8], strides = [1, 1]} : vector<8x32xf32> to vector<8x8xf32>
    %62 = vector.extract_strided_slice %59 {offsets = [0, 16], sizes = [8, 8], strides = [1, 1]} : vector<8x32xf32> to vector<8x8xf32>
    %63 = vector.extract_strided_slice %59 {offsets = [0, 24], sizes = [8, 8], strides = [1, 1]} : vector<8x32xf32> to vector<8x8xf32>
    %64 = vector.shape_cast %55 : vector<8x8xf32> to vector<1x8x8xf32>
    %65 = vector.shape_cast %56 : vector<8x8xf32> to vector<1x8x8xf32>
    %66 = vector.shape_cast %57 : vector<8x8xf32> to vector<1x8x8xf32>
    %67 = vector.shape_cast %58 : vector<8x8xf32> to vector<1x8x8xf32>
    %68 = vector.shape_cast %60 : vector<8x8xf32> to vector<1x8x8xf32>
    %69 = vector.shape_cast %61 : vector<8x8xf32> to vector<1x8x8xf32>
    %70 = vector.shape_cast %62 : vector<8x8xf32> to vector<1x8x8xf32>
    %71 = vector.shape_cast %63 : vector<8x8xf32> to vector<1x8x8xf32>
    %72 = tpu.concatenate %64, %65, %66, %67, %68, %69, %70, %71 in 0 : vector<1x8x8xf32>, vector<1x8x8xf32>, vector<1x8x8xf32>, vector<1x8x8xf32>, vector<1x8x8xf32>, vector<1x8x8xf32>, vector<1x8x8xf32>, vector<1x8x8xf32> -> vector<8x8x8xf32>
    %73 = arith.truncf %72 : vector<8x8x8xf32> to vector<8x8x8xbf16>
    "tpu.trace_start"() <{level = 10 : i32, message = "bqd,bkd->bqk"}> : () -> ()
    %cst_11 = arith.constant dense<0.000000e+00> : vector<8x8x8xf32>
    %74 = tpu.matmul %33, %53, %cst_11 {dimension_numbers = #tpu.dot_dimension_numbers<[2], [2], [1], [1], [0, 0, 0, 1, 1, 1], [0], [0]>} : vector<8x8x8xbf16>, vector<8x8x8xbf16>, vector<8x8x8xf32> -> vector<8x8x8xf32>
    "tpu.trace_stop"() : () -> ()
    %75 = vector.broadcast %11 : vector<8x1x8xf32> to vector<8x8x8xf32>
    %76 = arith.addf %74, %75 : vector<8x8x8xf32>
    %cst_12 = arith.constant dense<0xFF800000> : vector<8x8xf32>
    %77 = vector.multi_reduction <maximumf>, %76, %cst_12 [2] : vector<8x8x8xf32> to vector<8x8xf32>
    %78 = vector.shape_cast %77 : vector<8x8xf32> to vector<8x8x1xf32>
    %79 = vector.broadcast %78 : vector<8x8x1xf32> to vector<8x8x8xf32>
    %80 = arith.subf %76, %79 : vector<8x8x8xf32>
    %81 = math.exp %80 : vector<8x8x8xf32>
    %cst_13 = arith.constant dense<0.000000e+00> : vector<8x8xf32>
    %82 = vector.multi_reduction <add>, %81, %cst_13 [2] : vector<8x8x8xf32> to vector<8x8xf32>
    %83 = vector.shape_cast %82 : vector<8x8xf32> to vector<8x8x1xf32>
    %84 = tpu.reciprocal %83 {approx = true} : vector<8x8x1xf32> -> vector<8x8x1xf32>
    %85 = vector.broadcast %84 : vector<8x8x1xf32> to vector<8x8x8xf32>
    %86 = arith.mulf %81, %85 : vector<8x8x8xf32>
    %87 = arith.truncf %86 : vector<8x8x8xf32> to vector<8x8x8xbf16>
    "tpu.trace_start"() <{level = 10 : i32, message = "bqk,bkd->bqd"}> : () -> ()
    %cst_14 = arith.constant dense<0.000000e+00> : vector<8x8x8xf32>
    %88 = tpu.matmul %87, %73, %cst_14 {dimension_numbers = #tpu.dot_dimension_numbers<[2], [1], [1], [2], [0, 0, 0, 1, 1, 2], [0], [0]>} : vector<8x8x8xbf16>, vector<8x8x8xbf16>, vector<8x8x8xf32> -> vector<8x8x8xf32>
    "tpu.trace_stop"() : () -> ()
    %89 = vector.extract_strided_slice %88 {offsets = [0, 0, 0], sizes = [1, 8, 8], strides = [1, 1, 1]} : vector<8x8x8xf32> to vector<1x8x8xf32>
    %90 = vector.shape_cast %89 : vector<1x8x8xf32> to vector<8x8xf32>
    %91 = vector.extract_strided_slice %88 {offsets = [1, 0, 0], sizes = [1, 8, 8], strides = [1, 1, 1]} : vector<8x8x8xf32> to vector<1x8x8xf32>
    %92 = vector.shape_cast %91 : vector<1x8x8xf32> to vector<8x8xf32>
    %93 = vector.extract_strided_slice %88 {offsets = [2, 0, 0], sizes = [1, 8, 8], strides = [1, 1, 1]} : vector<8x8x8xf32> to vector<1x8x8xf32>
    %94 = vector.shape_cast %93 : vector<1x8x8xf32> to vector<8x8xf32>
    %95 = vector.extract_strided_slice %88 {offsets = [3, 0, 0], sizes = [1, 8, 8], strides = [1, 1, 1]} : vector<8x8x8xf32> to vector<1x8x8xf32>
    %96 = vector.shape_cast %95 : vector<1x8x8xf32> to vector<8x8xf32>
    %97 = tpu.concatenate %90, %92, %94, %96 in 1 : vector<8x8xf32>, vector<8x8xf32>, vector<8x8xf32>, vector<8x8xf32> -> vector<8x32xf32>
    %98 = vector.extract_strided_slice %88 {offsets = [4, 0, 0], sizes = [1, 8, 8], strides = [1, 1, 1]} : vector<8x8x8xf32> to vector<1x8x8xf32>
    %99 = vector.shape_cast %98 : vector<1x8x8xf32> to vector<8x8xf32>
    %100 = vector.extract_strided_slice %88 {offsets = [5, 0, 0], sizes = [1, 8, 8], strides = [1, 1, 1]} : vector<8x8x8xf32> to vector<1x8x8xf32>
    %101 = vector.shape_cast %100 : vector<1x8x8xf32> to vector<8x8xf32>
    %102 = vector.extract_strided_slice %88 {offsets = [6, 0, 0], sizes = [1, 8, 8], strides = [1, 1, 1]} : vector<8x8x8xf32> to vector<1x8x8xf32>
    %103 = vector.shape_cast %102 : vector<1x8x8xf32> to vector<8x8xf32>
    %104 = vector.extract_strided_slice %88 {offsets = [7, 0, 0], sizes = [1, 8, 8], strides = [1, 1, 1]} : vector<8x8x8xf32> to vector<1x8x8xf32>
    %105 = vector.shape_cast %104 : vector<1x8x8xf32> to vector<8x8xf32>
    %106 = tpu.concatenate %99, %101, %103, %105 in 1 : vector<8x8xf32>, vector<8x8xf32>, vector<8x8xf32>, vector<8x8xf32> -> vector<8x32xf32>
    %107 = tpu.concatenate %97, %106 in 0 : vector<8x32xf32>, vector<8x32xf32> -> vector<16x32xf32>
    %c1 = arith.constant 1 : index
    %c0_15 = arith.constant 0 : index
    %108 = vector.load %arg11[%c1, %c0_15] : memref<16x96xf32, #tpu.memory_space<vmem>>, vector<1x32xf32>
    %109 = arith.truncf %107 : vector<16x32xf32> to vector<16x32xbf16>
    %c0_16 = arith.constant 0 : index
    %c0_17 = arith.constant 0 : index
    %110 = vector.load %arg5[%c0_16, %c0_17] : memref<32x32xbf16, #tpu.memory_space<vmem>>, vector<32x32xbf16>
    %cst_18 = arith.constant dense<0.000000e+00> : vector<16x32xf32>
    %111 = tpu.matmul %109, %110, %cst_18 {dimension_numbers = #tpu.dot_dimension_numbers<[1], [0], [0], [1], [0, 0, 1, 1], [], []>} : vector<16x32xbf16>, vector<32x32xbf16>, vector<16x32xf32> -> vector<16x32xf32>
    %112 = vector.broadcast %108 : vector<1x32xf32> to vector<16x32xf32>
    %113 = arith.addf %111, %112 : vector<16x32xf32>
    %c7 = arith.constant 7 : index
    %c0_19 = arith.constant 0 : index
    %114 = vector.load %arg11[%c7, %c0_19] : memref<16x96xf32, #tpu.memory_space<vmem>>, vector<1x32xf32>
    %c8 = arith.constant 8 : index
    %c0_20 = arith.constant 0 : index
    %115 = vector.load %arg11[%c8, %c0_20] : memref<16x96xf32, #tpu.memory_space<vmem>>, vector<1x32xf32>
    %116 = arith.addf %113, %0 : vector<16x32xf32>
    %cst_21 = arith.constant dense<0.000000e+00> : vector<16xf32>
    %117 = vector.multi_reduction <add>, %116, %cst_21 [1] : vector<16x32xf32> to vector<16xf32>
    %118 = vector.shape_cast %117 : vector<16xf32> to vector<16x1xf32>
    %cst_22 = arith.constant 3.200000e+01 : f32
    %119 = vector.broadcast %cst_22 : f32 to vector<16x1xf32>
    %120 = arith.divf %118, %119 : vector<16x1xf32>
    %121 = vector.broadcast %120 : vector<16x1xf32> to vector<16x32xf32>
    %122 = arith.subf %116, %121 : vector<16x32xf32>
    %123 = arith.mulf %122, %122 : vector<16x32xf32>
    %cst_23 = arith.constant dense<0.000000e+00> : vector<16xf32>
    %124 = vector.multi_reduction <add>, %123, %cst_23 [1] : vector<16x32xf32> to vector<16xf32>
    %125 = vector.shape_cast %124 : vector<16xf32> to vector<16x1xf32>
    %cst_24 = arith.constant 3.200000e+01 : f32
    %126 = vector.broadcast %cst_24 : f32 to vector<16x1xf32>
    %127 = arith.divf %125, %126 : vector<16x1xf32>
    %128 = vector.broadcast %120 : vector<16x1xf32> to vector<16x32xf32>
    %129 = arith.subf %116, %128 : vector<16x32xf32>
    %cst_25 = arith.constant 9.99999974E-6 : f32
    %130 = vector.broadcast %cst_25 : f32 to vector<16x1xf32>
    %131 = arith.addf %127, %130 : vector<16x1xf32>
    %132 = math.rsqrt %131 : vector<16x1xf32>
    %133 = vector.broadcast %132 : vector<16x1xf32> to vector<16x32xf32>
    %134 = arith.mulf %129, %133 : vector<16x32xf32>
    %135 = vector.broadcast %114 : vector<1x32xf32> to vector<16x32xf32>
    %136 = arith.mulf %134, %135 : vector<16x32xf32>
    %137 = vector.broadcast %115 : vector<1x32xf32> to vector<16x32xf32>
    %138 = arith.addf %136, %137 : vector<16x32xf32>
    %c2 = arith.constant 2 : index
    %c0_26 = arith.constant 0 : index
    %139 = vector.load %arg11[%c2, %c0_26] : memref<16x96xf32, #tpu.memory_space<vmem>>, vector<1x32xf32>
    %140 = arith.truncf %138 : vector<16x32xf32> to vector<16x32xbf16>
    %c0_27 = arith.constant 0 : index
    %c0_28 = arith.constant 0 : index
    %141 = vector.load %arg6[%c0_27, %c0_28] : memref<32x32xbf16, #tpu.memory_space<vmem>>, vector<32x32xbf16>
    %cst_29 = arith.constant dense<0.000000e+00> : vector<16x32xf32>
    %142 = tpu.matmul %140, %141, %cst_29 {dimension_numbers = #tpu.dot_dimension_numbers<[1], [0], [0], [1], [0, 0, 1, 1], [], []>} : vector<16x32xbf16>, vector<32x32xbf16>, vector<16x32xf32> -> vector<16x32xf32>
    %143 = vector.broadcast %139 : vector<1x32xf32> to vector<16x32xf32>
    %144 = arith.addf %142, %143 : vector<16x32xf32>
    %c3 = arith.constant 3 : index
    %c0_30 = arith.constant 0 : index
    %145 = vector.load %arg11[%c3, %c0_30] : memref<16x96xf32, #tpu.memory_space<vmem>>, vector<1x64xf32>
    %146 = arith.truncf %1 : vector<32x32xf32> to vector<32x32xbf16>
    %c0_31 = arith.constant 0 : index
    %c0_32 = arith.constant 0 : index
    %147 = vector.load %arg7[%c0_31, %c0_32] : memref<32x64xbf16, #tpu.memory_space<vmem>>, vector<32x64xbf16>
    %cst_33 = arith.constant dense<0.000000e+00> : vector<32x64xf32>
    %148 = tpu.matmul %146, %147, %cst_33 {dimension_numbers = #tpu.dot_dimension_numbers<[1], [0], [0], [1], [0, 0, 1, 1], [], []>} : vector<32x32xbf16>, vector<32x64xbf16>, vector<32x64xf32> -> vector<32x64xf32>
    %149 = vector.broadcast %145 : vector<1x64xf32> to vector<32x64xf32>
    %150 = arith.addf %148, %149 : vector<32x64xf32>
    %151 = vector.extract_strided_slice %150 {offsets = [0, 0], sizes = [32, 32], strides = [1, 1]} : vector<32x64xf32> to vector<32x32xf32>
    %152 = vector.extract_strided_slice %150 {offsets = [0, 32], sizes = [32, 32], strides = [1, 1]} : vector<32x64xf32> to vector<32x32xf32>
    %c0_34 = arith.constant 0 : index
    %c0_35 = arith.constant 0 : index
    %c0_36 = arith.constant 0 : index
    %153 = vector.load %arg3[%c0_34, %c0_35, %c0_36] : memref<8x1x16xf32, #tpu.memory_space<vmem>>, vector<8x1x16xf32>
    %cst_37 = arith.constant 0.353553385 : f32
    %154 = vector.broadcast %cst_37 : f32 to vector<16x32xf32>
    %155 = arith.mulf %144, %154 : vector<16x32xf32>
    %156 = vector.extract_strided_slice %155 {offsets = [0, 0], sizes = [8, 32], strides = [1, 1]} : vector<16x32xf32> to vector<8x32xf32>
    %157 = vector.extract_strided_slice %156 {offsets = [0, 0], sizes = [8, 8], strides = [1, 1]} : vector<8x32xf32> to vector<8x8xf32>
    %158 = vector.extract_strided_slice %156 {offsets = [0, 8], sizes = [8, 8], strides = [1, 1]} : vector<8x32xf32> to vector<8x8xf32>
    %159 = vector.extract_strided_slice %156 {offsets = [0, 16], sizes = [8, 8], strides = [1, 1]} : vector<8x32xf32> to vector<8x8xf32>
    %160 = vector.extract_strided_slice %156 {offsets = [0, 24], sizes = [8, 8], strides = [1, 1]} : vector<8x32xf32> to vector<8x8xf32>
    %161 = vector.extract_strided_slice %155 {offsets = [8, 0], sizes = [8, 32], strides = [1, 1]} : vector<16x32xf32> to vector<8x32xf32>
    %162 = vector.extract_strided_slice %161 {offsets = [0, 0], sizes = [8, 8], strides = [1, 1]} : vector<8x32xf32> to vector<8x8xf32>
    %163 = vector.extract_strided_slice %161 {offsets = [0, 8], sizes = [8, 8], strides = [1, 1]} : vector<8x32xf32> to vector<8x8xf32>
    %164 = vector.extract_strided_slice %161 {offsets = [0, 16], sizes = [8, 8], strides = [1, 1]} : vector<8x32xf32> to vector<8x8xf32>
    %165 = vector.extract_strided_slice %161 {offsets = [0, 24], sizes = [8, 8], strides = [1, 1]} : vector<8x32xf32> to vector<8x8xf32>
    %166 = vector.shape_cast %157 : vector<8x8xf32> to vector<1x8x8xf32>
    %167 = vector.shape_cast %158 : vector<8x8xf32> to vector<1x8x8xf32>
    %168 = vector.shape_cast %159 : vector<8x8xf32> to vector<1x8x8xf32>
    %169 = vector.shape_cast %160 : vector<8x8xf32> to vector<1x8x8xf32>
    %170 = vector.shape_cast %162 : vector<8x8xf32> to vector<1x8x8xf32>
    %171 = vector.shape_cast %163 : vector<8x8xf32> to vector<1x8x8xf32>
    %172 = vector.shape_cast %164 : vector<8x8xf32> to vector<1x8x8xf32>
    %173 = vector.shape_cast %165 : vector<8x8xf32> to vector<1x8x8xf32>
    %174 = tpu.concatenate %166, %167, %168, %169, %170, %171, %172, %173 in 0 : vector<1x8x8xf32>, vector<1x8x8xf32>, vector<1x8x8xf32>, vector<1x8x8xf32>, vector<1x8x8xf32>, vector<1x8x8xf32>, vector<1x8x8xf32>, vector<1x8x8xf32> -> vector<8x8x8xf32>
    %175 = arith.truncf %174 : vector<8x8x8xf32> to vector<8x8x8xbf16>
    %176 = vector.extract_strided_slice %151 {offsets = [0, 0], sizes = [16, 32], strides = [1, 1]} : vector<32x32xf32> to vector<16x32xf32>
    %177 = vector.extract_strided_slice %176 {offsets = [0, 0], sizes = [16, 8], strides = [1, 1]} : vector<16x32xf32> to vector<16x8xf32>
    %178 = vector.extract_strided_slice %176 {offsets = [0, 8], sizes = [16, 8], strides = [1, 1]} : vector<16x32xf32> to vector<16x8xf32>
    %179 = vector.extract_strided_slice %176 {offsets = [0, 16], sizes = [16, 8], strides = [1, 1]} : vector<16x32xf32> to vector<16x8xf32>
    %180 = vector.extract_strided_slice %176 {offsets = [0, 24], sizes = [16, 8], strides = [1, 1]} : vector<16x32xf32> to vector<16x8xf32>
    %181 = vector.extract_strided_slice %151 {offsets = [16, 0], sizes = [16, 32], strides = [1, 1]} : vector<32x32xf32> to vector<16x32xf32>
    %182 = vector.extract_strided_slice %181 {offsets = [0, 0], sizes = [16, 8], strides = [1, 1]} : vector<16x32xf32> to vector<16x8xf32>
    %183 = vector.extract_strided_slice %181 {offsets = [0, 8], sizes = [16, 8], strides = [1, 1]} : vector<16x32xf32> to vector<16x8xf32>
    %184 = vector.extract_strided_slice %181 {offsets = [0, 16], sizes = [16, 8], strides = [1, 1]} : vector<16x32xf32> to vector<16x8xf32>
    %185 = vector.extract_strided_slice %181 {offsets = [0, 24], sizes = [16, 8], strides = [1, 1]} : vector<16x32xf32> to vector<16x8xf32>
    %186 = vector.shape_cast %177 : vector<16x8xf32> to vector<1x16x8xf32>
    %187 = vector.shape_cast %178 : vector<16x8xf32> to vector<1x16x8xf32>
    %188 = vector.shape_cast %179 : vector<16x8xf32> to vector<1x16x8xf32>
    %189 = vector.shape_cast %180 : vector<16x8xf32> to vector<1x16x8xf32>
    %190 = vector.shape_cast %182 : vector<16x8xf32> to vector<1x16x8xf32>
    %191 = vector.shape_cast %183 : vector<16x8xf32> to vector<1x16x8xf32>
    %192 = vector.shape_cast %184 : vector<16x8xf32> to vector<1x16x8xf32>
    %193 = vector.shape_cast %185 : vector<16x8xf32> to vector<1x16x8xf32>
    %194 = tpu.concatenate %186, %187, %188, %189, %190, %191, %192, %193 in 0 : vector<1x16x8xf32>, vector<1x16x8xf32>, vector<1x16x8xf32>, vector<1x16x8xf32>, vector<1x16x8xf32>, vector<1x16x8xf32>, vector<1x16x8xf32>, vector<1x16x8xf32> -> vector<8x16x8xf32>
    %195 = arith.truncf %194 : vector<8x16x8xf32> to vector<8x16x8xbf16>
    %196 = vector.extract_strided_slice %152 {offsets = [0, 0], sizes = [16, 32], strides = [1, 1]} : vector<32x32xf32> to vector<16x32xf32>
    %197 = vector.extract_strided_slice %196 {offsets = [0, 0], sizes = [16, 8], strides = [1, 1]} : vector<16x32xf32> to vector<16x8xf32>
    %198 = vector.extract_strided_slice %196 {offsets = [0, 8], sizes = [16, 8], strides = [1, 1]} : vector<16x32xf32> to vector<16x8xf32>
    %199 = vector.extract_strided_slice %196 {offsets = [0, 16], sizes = [16, 8], strides = [1, 1]} : vector<16x32xf32> to vector<16x8xf32>
    %200 = vector.extract_strided_slice %196 {offsets = [0, 24], sizes = [16, 8], strides = [1, 1]} : vector<16x32xf32> to vector<16x8xf32>
    %201 = vector.extract_strided_slice %152 {offsets = [16, 0], sizes = [16, 32], strides = [1, 1]} : vector<32x32xf32> to vector<16x32xf32>
    %202 = vector.extract_strided_slice %201 {offsets = [0, 0], sizes = [16, 8], strides = [1, 1]} : vector<16x32xf32> to vector<16x8xf32>
    %203 = vector.extract_strided_slice %201 {offsets = [0, 8], sizes = [16, 8], strides = [1, 1]} : vector<16x32xf32> to vector<16x8xf32>
    %204 = vector.extract_strided_slice %201 {offsets = [0, 16], sizes = [16, 8], strides = [1, 1]} : vector<16x32xf32> to vector<16x8xf32>
    %205 = vector.extract_strided_slice %201 {offsets = [0, 24], sizes = [16, 8], strides = [1, 1]} : vector<16x32xf32> to vector<16x8xf32>
    %206 = vector.shape_cast %197 : vector<16x8xf32> to vector<1x16x8xf32>
    %207 = vector.shape_cast %198 : vector<16x8xf32> to vector<1x16x8xf32>
    %208 = vector.shape_cast %199 : vector<16x8xf32> to vector<1x16x8xf32>
    %209 = vector.shape_cast %200 : vector<16x8xf32> to vector<1x16x8xf32>
    %210 = vector.shape_cast %202 : vector<16x8xf32> to vector<1x16x8xf32>
    %211 = vector.shape_cast %203 : vector<16x8xf32> to vector<1x16x8xf32>
    %212 = vector.shape_cast %204 : vector<16x8xf32> to vector<1x16x8xf32>
    %213 = vector.shape_cast %205 : vector<16x8xf32> to vector<1x16x8xf32>
    %214 = tpu.concatenate %206, %207, %208, %209, %210, %211, %212, %213 in 0 : vector<1x16x8xf32>, vector<1x16x8xf32>, vector<1x16x8xf32>, vector<1x16x8xf32>, vector<1x16x8xf32>, vector<1x16x8xf32>, vector<1x16x8xf32>, vector<1x16x8xf32> -> vector<8x16x8xf32>
    %215 = arith.truncf %214 : vector<8x16x8xf32> to vector<8x16x8xbf16>
    "tpu.trace_start"() <{level = 10 : i32, message = "bqd,bkd->bqk"}> : () -> ()
    %cst_38 = arith.constant dense<0.000000e+00> : vector<8x8x16xf32>
    %216 = tpu.matmul %175, %195, %cst_38 {dimension_numbers = #tpu.dot_dimension_numbers<[2], [2], [1], [1], [0, 0, 0, 1, 1, 1], [0], [0]>} : vector<8x8x8xbf16>, vector<8x16x8xbf16>, vector<8x8x16xf32> -> vector<8x8x16xf32>
    "tpu.trace_stop"() : () -> ()
    %217 = vector.broadcast %153 : vector<8x1x16xf32> to vector<8x8x16xf32>
    %218 = arith.addf %216, %217 : vector<8x8x16xf32>
    %cst_39 = arith.constant dense<0xFF800000> : vector<8x8xf32>
    %219 = vector.multi_reduction <maximumf>, %218, %cst_39 [2] : vector<8x8x16xf32> to vector<8x8xf32>
    %220 = vector.shape_cast %219 : vector<8x8xf32> to vector<8x8x1xf32>
    %221 = vector.broadcast %220 : vector<8x8x1xf32> to vector<8x8x16xf32>
    %222 = arith.subf %218, %221 : vector<8x8x16xf32>
    %223 = math.exp %222 : vector<8x8x16xf32>
    %cst_40 = arith.constant dense<0.000000e+00> : vector<8x8xf32>
    %224 = vector.multi_reduction <add>, %223, %cst_40 [2] : vector<8x8x16xf32> to vector<8x8xf32>
    %225 = vector.shape_cast %224 : vector<8x8xf32> to vector<8x8x1xf32>
    %226 = tpu.reciprocal %225 {approx = true} : vector<8x8x1xf32> -> vector<8x8x1xf32>
    %227 = vector.broadcast %226 : vector<8x8x1xf32> to vector<8x8x16xf32>
    %228 = arith.mulf %223, %227 : vector<8x8x16xf32>
    %229 = arith.truncf %228 : vector<8x8x16xf32> to vector<8x8x16xbf16>
    "tpu.trace_start"() <{level = 10 : i32, message = "bqk,bkd->bqd"}> : () -> ()
    %cst_41 = arith.constant dense<0.000000e+00> : vector<8x8x8xf32>
    %230 = tpu.matmul %229, %215, %cst_41 {dimension_numbers = #tpu.dot_dimension_numbers<[2], [1], [1], [2], [0, 0, 0, 1, 1, 2], [0], [0]>} : vector<8x8x16xbf16>, vector<8x16x8xbf16>, vector<8x8x8xf32> -> vector<8x8x8xf32>
    "tpu.trace_stop"() : () -> ()
    %231 = vector.extract_strided_slice %230 {offsets = [0, 0, 0], sizes = [1, 8, 8], strides = [1, 1, 1]} : vector<8x8x8xf32> to vector<1x8x8xf32>
    %232 = vector.shape_cast %231 : vector<1x8x8xf32> to vector<8x8xf32>
    %233 = vector.extract_strided_slice %230 {offsets = [1, 0, 0], sizes = [1, 8, 8], strides = [1, 1, 1]} : vector<8x8x8xf32> to vector<1x8x8xf32>
    %234 = vector.shape_cast %233 : vector<1x8x8xf32> to vector<8x8xf32>
    %235 = vector.extract_strided_slice %230 {offsets = [2, 0, 0], sizes = [1, 8, 8], strides = [1, 1, 1]} : vector<8x8x8xf32> to vector<1x8x8xf32>
    %236 = vector.shape_cast %235 : vector<1x8x8xf32> to vector<8x8xf32>
    %237 = vector.extract_strided_slice %230 {offsets = [3, 0, 0], sizes = [1, 8, 8], strides = [1, 1, 1]} : vector<8x8x8xf32> to vector<1x8x8xf32>
    %238 = vector.shape_cast %237 : vector<1x8x8xf32> to vector<8x8xf32>
    %239 = tpu.concatenate %232, %234, %236, %238 in 1 : vector<8x8xf32>, vector<8x8xf32>, vector<8x8xf32>, vector<8x8xf32> -> vector<8x32xf32>
    %240 = vector.extract_strided_slice %230 {offsets = [4, 0, 0], sizes = [1, 8, 8], strides = [1, 1, 1]} : vector<8x8x8xf32> to vector<1x8x8xf32>
    %241 = vector.shape_cast %240 : vector<1x8x8xf32> to vector<8x8xf32>
    %242 = vector.extract_strided_slice %230 {offsets = [5, 0, 0], sizes = [1, 8, 8], strides = [1, 1, 1]} : vector<8x8x8xf32> to vector<1x8x8xf32>
    %243 = vector.shape_cast %242 : vector<1x8x8xf32> to vector<8x8xf32>
    %244 = vector.extract_strided_slice %230 {offsets = [6, 0, 0], sizes = [1, 8, 8], strides = [1, 1, 1]} : vector<8x8x8xf32> to vector<1x8x8xf32>
    %245 = vector.shape_cast %244 : vector<1x8x8xf32> to vector<8x8xf32>
    %246 = vector.extract_strided_slice %230 {offsets = [7, 0, 0], sizes = [1, 8, 8], strides = [1, 1, 1]} : vector<8x8x8xf32> to vector<1x8x8xf32>
    %247 = vector.shape_cast %246 : vector<1x8x8xf32> to vector<8x8xf32>
    %248 = tpu.concatenate %241, %243, %245, %247 in 1 : vector<8x8xf32>, vector<8x8xf32>, vector<8x8xf32>, vector<8x8xf32> -> vector<8x32xf32>
    %249 = tpu.concatenate %239, %248 in 0 : vector<8x32xf32>, vector<8x32xf32> -> vector<16x32xf32>
    %250 = vector.extract_strided_slice %228 {offsets = [0, 0, 0], sizes = [1, 8, 16], strides = [1, 1, 1]} : vector<8x8x16xf32> to vector<1x8x16xf32>
    %251 = vector.shape_cast %250 : vector<1x8x16xf32> to vector<8x16xf32>
    %cst_42 = arith.constant 0.000000e+00 : f32
    %252 = vector.broadcast %cst_42 : f32 to vector<8x16xf32>
    %253 = arith.addf %252, %251 : vector<8x16xf32>
    %254 = vector.extract_strided_slice %228 {offsets = [1, 0, 0], sizes = [1, 8, 16], strides = [1, 1, 1]} : vector<8x8x16xf32> to vector<1x8x16xf32>
    %255 = vector.shape_cast %254 : vector<1x8x16xf32> to vector<8x16xf32>
    %256 = arith.addf %253, %255 : vector<8x16xf32>
    %257 = vector.extract_strided_slice %228 {offsets = [2, 0, 0], sizes = [1, 8, 16], strides = [1, 1, 1]} : vector<8x8x16xf32> to vector<1x8x16xf32>
    %258 = vector.shape_cast %257 : vector<1x8x16xf32> to vector<8x16xf32>
    %259 = arith.addf %256, %258 : vector<8x16xf32>
    %260 = vector.extract_strided_slice %228 {offsets = [3, 0, 0], sizes = [1, 8, 16], strides = [1, 1, 1]} : vector<8x8x16xf32> to vector<1x8x16xf32>
    %261 = vector.shape_cast %260 : vector<1x8x16xf32> to vector<8x16xf32>
    %262 = arith.addf %259, %261 : vector<8x16xf32>
    %cst_43 = arith.constant 2.500000e-01 : f32
    %263 = vector.broadcast %cst_43 : f32 to vector<8x16xf32>
    %264 = arith.mulf %262, %263 : vector<8x16xf32>
    %265 = vector.extract_strided_slice %228 {offsets = [4, 0, 0], sizes = [1, 8, 16], strides = [1, 1, 1]} : vector<8x8x16xf32> to vector<1x8x16xf32>
    %266 = vector.shape_cast %265 : vector<1x8x16xf32> to vector<8x16xf32>
    %cst_44 = arith.constant 0.000000e+00 : f32
    %267 = vector.broadcast %cst_44 : f32 to vector<8x16xf32>
    %268 = arith.addf %267, %266 : vector<8x16xf32>
    %269 = vector.extract_strided_slice %228 {offsets = [5, 0, 0], sizes = [1, 8, 16], strides = [1, 1, 1]} : vector<8x8x16xf32> to vector<1x8x16xf32>
    %270 = vector.shape_cast %269 : vector<1x8x16xf32> to vector<8x16xf32>
    %271 = arith.addf %268, %270 : vector<8x16xf32>
    %272 = vector.extract_strided_slice %228 {offsets = [6, 0, 0], sizes = [1, 8, 16], strides = [1, 1, 1]} : vector<8x8x16xf32> to vector<1x8x16xf32>
    %273 = vector.shape_cast %272 : vector<1x8x16xf32> to vector<8x16xf32>
    %274 = arith.addf %271, %273 : vector<8x16xf32>
    %275 = vector.extract_strided_slice %228 {offsets = [7, 0, 0], sizes = [1, 8, 16], strides = [1, 1, 1]} : vector<8x8x16xf32> to vector<1x8x16xf32>
    %276 = vector.shape_cast %275 : vector<1x8x16xf32> to vector<8x16xf32>
    %277 = arith.addf %274, %276 : vector<8x16xf32>
    %cst_45 = arith.constant 2.500000e-01 : f32
    %278 = vector.broadcast %cst_45 : f32 to vector<8x16xf32>
    %279 = arith.mulf %277, %278 : vector<8x16xf32>
    %280 = vector.shape_cast %264 : vector<8x16xf32> to vector<1x8x16xf32>
    %281 = vector.shape_cast %279 : vector<8x16xf32> to vector<1x8x16xf32>
    %282 = tpu.concatenate %280, %281 in 0 : vector<1x8x16xf32>, vector<1x8x16xf32> -> vector<2x8x16xf32>
    %c4 = arith.constant 4 : index
    %c0_46 = arith.constant 0 : index
    %283 = vector.load %arg11[%c4, %c0_46] : memref<16x96xf32, #tpu.memory_space<vmem>>, vector<1x32xf32>
    %284 = arith.truncf %249 : vector<16x32xf32> to vector<16x32xbf16>
    %c0_47 = arith.constant 0 : index
    %c0_48 = arith.constant 0 : index
    %285 = vector.load %arg8[%c0_47, %c0_48] : memref<32x32xbf16, #tpu.memory_space<vmem>>, vector<32x32xbf16>
    %cst_49 = arith.constant dense<0.000000e+00> : vector<16x32xf32>
    %286 = tpu.matmul %284, %285, %cst_49 {dimension_numbers = #tpu.dot_dimension_numbers<[1], [0], [0], [1], [0, 0, 1, 1], [], []>} : vector<16x32xbf16>, vector<32x32xbf16>, vector<16x32xf32> -> vector<16x32xf32>
    %287 = vector.broadcast %283 : vector<1x32xf32> to vector<16x32xf32>
    %288 = arith.addf %286, %287 : vector<16x32xf32>
    %c9 = arith.constant 9 : index
    %c0_50 = arith.constant 0 : index
    %289 = vector.load %arg11[%c9, %c0_50] : memref<16x96xf32, #tpu.memory_space<vmem>>, vector<1x32xf32>
    %c10 = arith.constant 10 : index
    %c0_51 = arith.constant 0 : index
    %290 = vector.load %arg11[%c10, %c0_51] : memref<16x96xf32, #tpu.memory_space<vmem>>, vector<1x32xf32>
    %291 = arith.addf %288, %138 : vector<16x32xf32>
    %cst_52 = arith.constant dense<0.000000e+00> : vector<16xf32>
    %292 = vector.multi_reduction <add>, %291, %cst_52 [1] : vector<16x32xf32> to vector<16xf32>
    %293 = vector.shape_cast %292 : vector<16xf32> to vector<16x1xf32>
    %cst_53 = arith.constant 3.200000e+01 : f32
    %294 = vector.broadcast %cst_53 : f32 to vector<16x1xf32>
    %295 = arith.divf %293, %294 : vector<16x1xf32>
    %296 = vector.broadcast %295 : vector<16x1xf32> to vector<16x32xf32>
    %297 = arith.subf %291, %296 : vector<16x32xf32>
    %298 = arith.mulf %297, %297 : vector<16x32xf32>
    %cst_54 = arith.constant dense<0.000000e+00> : vector<16xf32>
    %299 = vector.multi_reduction <add>, %298, %cst_54 [1] : vector<16x32xf32> to vector<16xf32>
    %300 = vector.shape_cast %299 : vector<16xf32> to vector<16x1xf32>
    %cst_55 = arith.constant 3.200000e+01 : f32
    %301 = vector.broadcast %cst_55 : f32 to vector<16x1xf32>
    %302 = arith.divf %300, %301 : vector<16x1xf32>
    %303 = vector.broadcast %295 : vector<16x1xf32> to vector<16x32xf32>
    %304 = arith.subf %291, %303 : vector<16x32xf32>
    %cst_56 = arith.constant 9.99999974E-6 : f32
    %305 = vector.broadcast %cst_56 : f32 to vector<16x1xf32>
    %306 = arith.addf %302, %305 : vector<16x1xf32>
    %307 = math.rsqrt %306 : vector<16x1xf32>
    %308 = vector.broadcast %307 : vector<16x1xf32> to vector<16x32xf32>
    %309 = arith.mulf %304, %308 : vector<16x32xf32>
    %310 = vector.broadcast %289 : vector<1x32xf32> to vector<16x32xf32>
    %311 = arith.mulf %309, %310 : vector<16x32xf32>
    %312 = vector.broadcast %290 : vector<1x32xf32> to vector<16x32xf32>
    %313 = arith.addf %311, %312 : vector<16x32xf32>
    %c5 = arith.constant 5 : index
    %c0_57 = arith.constant 0 : index
    %314 = vector.load %arg11[%c5, %c0_57] : memref<16x96xf32, #tpu.memory_space<vmem>>, vector<1x64xf32>
    %315 = arith.truncf %313 : vector<16x32xf32> to vector<16x32xbf16>
    %c0_58 = arith.constant 0 : index
    %c0_59 = arith.constant 0 : index
    %316 = vector.load %arg9[%c0_58, %c0_59] : memref<32x64xbf16, #tpu.memory_space<vmem>>, vector<32x64xbf16>
    %cst_60 = arith.constant dense<0.000000e+00> : vector<16x64xf32>
    %317 = tpu.matmul %315, %316, %cst_60 {dimension_numbers = #tpu.dot_dimension_numbers<[1], [0], [0], [1], [0, 0, 1, 1], [], []>} : vector<16x32xbf16>, vector<32x64xbf16>, vector<16x64xf32> -> vector<16x64xf32>
    %318 = vector.broadcast %314 : vector<1x64xf32> to vector<16x64xf32>
    %319 = arith.addf %317, %318 : vector<16x64xf32>
    %cst_61 = arith.constant 0.000000e+00 : f32
    %320 = vector.broadcast %cst_61 : f32 to vector<16x64xf32>
    %321 = arith.maximumf %319, %320 : vector<16x64xf32>
    %c6 = arith.constant 6 : index
    %c0_62 = arith.constant 0 : index
    %322 = vector.load %arg11[%c6, %c0_62] : memref<16x96xf32, #tpu.memory_space<vmem>>, vector<1x32xf32>
    %323 = arith.truncf %321 : vector<16x64xf32> to vector<16x64xbf16>
    %c0_63 = arith.constant 0 : index
    %c0_64 = arith.constant 0 : index
    %324 = vector.load %arg10[%c0_63, %c0_64] : memref<64x32xbf16, #tpu.memory_space<vmem>>, vector<64x32xbf16>
    %cst_65 = arith.constant dense<0.000000e+00> : vector<16x32xf32>
    %325 = tpu.matmul %323, %324, %cst_65 {dimension_numbers = #tpu.dot_dimension_numbers<[1], [0], [0], [1], [0, 0, 1, 1], [], []>} : vector<16x64xbf16>, vector<64x32xbf16>, vector<16x32xf32> -> vector<16x32xf32>
    %326 = vector.broadcast %322 : vector<1x32xf32> to vector<16x32xf32>
    %327 = arith.addf %325, %326 : vector<16x32xf32>
    %c11 = arith.constant 11 : index
    %c0_66 = arith.constant 0 : index
    %328 = vector.load %arg11[%c11, %c0_66] : memref<16x96xf32, #tpu.memory_space<vmem>>, vector<1x32xf32>
    %c12 = arith.constant 12 : index
    %c0_67 = arith.constant 0 : index
    %329 = vector.load %arg11[%c12, %c0_67] : memref<16x96xf32, #tpu.memory_space<vmem>>, vector<1x32xf32>
    %330 = arith.addf %327, %313 : vector<16x32xf32>
    %cst_68 = arith.constant dense<0.000000e+00> : vector<16xf32>
    %331 = vector.multi_reduction <add>, %330, %cst_68 [1] : vector<16x32xf32> to vector<16xf32>
    %332 = vector.shape_cast %331 : vector<16xf32> to vector<16x1xf32>
    %cst_69 = arith.constant 3.200000e+01 : f32
    %333 = vector.broadcast %cst_69 : f32 to vector<16x1xf32>
    %334 = arith.divf %332, %333 : vector<16x1xf32>
    %335 = vector.broadcast %334 : vector<16x1xf32> to vector<16x32xf32>
    %336 = arith.subf %330, %335 : vector<16x32xf32>
    %337 = arith.mulf %336, %336 : vector<16x32xf32>
    %cst_70 = arith.constant dense<0.000000e+00> : vector<16xf32>
    %338 = vector.multi_reduction <add>, %337, %cst_70 [1] : vector<16x32xf32> to vector<16xf32>
    %339 = vector.shape_cast %338 : vector<16xf32> to vector<16x1xf32>
    %cst_71 = arith.constant 3.200000e+01 : f32
    %340 = vector.broadcast %cst_71 : f32 to vector<16x1xf32>
    %341 = arith.divf %339, %340 : vector<16x1xf32>
    %342 = vector.broadcast %334 : vector<16x1xf32> to vector<16x32xf32>
    %343 = arith.subf %330, %342 : vector<16x32xf32>
    %cst_72 = arith.constant 9.99999974E-6 : f32
    %344 = vector.broadcast %cst_72 : f32 to vector<16x1xf32>
    %345 = arith.addf %341, %344 : vector<16x1xf32>
    %346 = math.rsqrt %345 : vector<16x1xf32>
    %347 = vector.broadcast %346 : vector<16x1xf32> to vector<16x32xf32>
    %348 = arith.mulf %343, %347 : vector<16x32xf32>
    %349 = vector.broadcast %328 : vector<1x32xf32> to vector<16x32xf32>
    %350 = arith.mulf %348, %349 : vector<16x32xf32>
    %351 = vector.broadcast %329 : vector<1x32xf32> to vector<16x32xf32>
    %352 = arith.addf %350, %351 : vector<16x32xf32>
    %c0_73 = arith.constant 0 : index
    %c0_74 = arith.constant 0 : index
    %353 = vector.load %arg12[%c0_73, %c0_74] : memref<16x32xf32, #tpu.memory_space<vmem>>, vector<16x32xf32>
    tpu.vector_store %arg12[%c0_73, %c0_74], %352 {strides = array<i32>} : memref<16x32xf32, #tpu.memory_space<vmem>>, vector<16x32xf32>,
    %c0_75 = arith.constant 0 : index
    %c0_76 = arith.constant 0 : index
    %c0_77 = arith.constant 0 : index
    %354 = vector.load %arg13[%c0_75, %c0_76, %c0_77] : memref<2x8x16xf32, #tpu.memory_space<vmem>>, vector<2x8x16xf32>
    tpu.vector_store %arg13[%c0_75, %c0_76, %c0_77], %282 {strides = array<i32>} : memref<2x8x16xf32, #tpu.memory_space<vmem>>, vector<2x8x16xf32>,
    return
  }
}

</mosaic_0001>

<bundles_post_ra>
// kernel: transformer_decoder_layer.1
= control target key start
LH: loop header
LB: loop body
LE: loop exit
PB: predicated region body
PF: predicated region fallthrough
CT: control target
= control target key end

     0   :  { %vm70_vm0 = vcmask 261120   ;;  %s2618_s0 = inlined_call_operand.vmem [shape: f32[16,32], index: 0, kind: input, shape index: {}]   ;;  %s2619_s1 = inlined_call_operand.vmem [shape: f32[32,32], index: 1, kind: input, shape index: {}]   ;;  %s2620_s2 = inlined_call_operand.vmem [shape: f32[8,1,8], index: 2, kind: input, shape index: {}]   ;;  %s2621_s3 = inlined_call_operand.vmem [shape: f32[8,1,16], index: 3, kind: input, shape index: {}]   ;;  %s2622_s4 = inlined_call_operand.vmem [shape: bf16[32,96], index: 4, kind: input, shape index: {}]   ;;  %s2623_s5 = inlined_call_operand.vmem [shape: bf16[32,32], index: 5, kind: input, shape index: {}]   ;;  %s2624_s6 = inlined_call_operand.vmem [shape: bf16[32,32], index: 6, kind: input, shape index: {}]   ;;  %s2625_s7 = inlined_call_operand.vmem [shape: bf16[32,64], index: 7, kind: input, shape index: {}]   ;;  %s2626_s8 = inlined_call_operand.vmem [shape: bf16[32,32], index: 8, kind: input, shape index: {}]   ;;  %s2627_s9 = inlined_call_operand.vmem [shape: bf16[32,64], index: 9, kind: input, shape index: {}]   ;;  %s2628_s10 = inlined_call_operand.vmem [shape: bf16[64,32], index: 10, kind: input, shape index: {}]   ;;  %s2629_s11 = inlined_call_operand.vmem [shape: f32[16,96], index: 11, kind: input, shape index: {}]   ;;  %s2630_s12 = inlined_call_operand.vmem [shape: f32[16,32], index: 12, kind: output, shape index: {0}]   ;;  %s2631_s13 = inlined_call_operand.hbm [shape: f32[2,8,16], index: 13, kind: output, shape index: {1}]  }
   0x1   :  { %v1810_v0 = vld [vmem:[%s2622_s4 + $0x8] sm:$0xff]  ;;  %v1809_v1 = vld [vmem:[%s2622_s4] sm:$0xff] }
   0x2   :  { %v2119_v2 = vld [vmem:[%s2618_s0] sm:$0xff]  ;;  %v2124_v3 = vld [vmem:[%s2618_s0 + $0x8] sm:$0xff]  ;;  %80 = vmatpush.bf16.msra.mxu0 %v1810_v0 }
   0x3   :  { %v52_v4 = vpack.c.bf16 %v2124_v3, %v2119_v2 }
   0x6   :  { %81 = vmatpush.bf16.msra.mxu0 %v1809_v1 }
   0x9   :  { %1713 = vmatmul.msk.bf16.vlgmr.msra.gmra.mxu0 %vm70_vm0, %v52_v4 }
   0xa   :  { %19 = vsyncpa [#allocation3], 0  ;;  %v1896_v5 = vld [vmem:[%s2629_s11] ss:$0 sm:$0xff]  ;;  %s2029_s17 = smov 104   ;;  %s2030_s0 = smov 120  }
   0xb   :  { %s2031_s18 = smov 112   ;;  %s2032_s19 = smov 96   ;;  %vm183_vm1 = vcmask 64512   ;;  %vm472_vm2 = vcmask 1043456   ;;  %vm649_vm3 = vcmask 130048   ;;  %vm651_vm4 = vcmask 195584  }
   0xc   :  { %s2033_s21 = smov 64   ;;  %s2035_s22 = smov 16  }
   0xd   :  { %s2036_s23 = smov 24  }
  0x86   :  { %v83_v6 = vpop.f32.mrf.mxu0 }
  0x87   :  { %v84_v7 = vadd.f32 %v1896_v5, %v83_v6 }
  0x89   :  { %133 = vrot.lane.b32.xlu1 %v84_v7, %s2029_s17  ;;  %127 = vrot.lane.b32.xlu0 %v84_v7, %s2030_s0  ;;  %v2138_v10 = vmul.f32 0.35355338, %v84_v7  ;;  %v146_v33 = vpack.c.bf16 %v84_v7, %v84_v7 }
  0x8b   :  { %v179_v35 = vunpack.c.l.b16 %v146_v33 }
  0x8d   :  { %v2174_v37 = vpack.c.b16 %v179_v35, %v179_v35 }
  0x8e   :  { %v85_v8 = vpop.f32.mrf.mxu0 }
  0x8f   :  { %v86_v9 = vadd.f32 %v1896_v5, %v85_v8  ;;  %v118_v5 = vpack.c.bf16 %v2138_v10, %v2138_v10 }
  0x91   :  { %140 = vrot.lane.b32.xlu2 %v86_v9, %s2031_s18  ;;  %137 = vrot.lane.b32.xlu1 %v86_v9, %s2030_s0  ;;  %v2158_v30 = vmul.f32 0.35355338, %v86_v9  ;;  %v150_v39 = vpack.c.bf16 %v86_v9, %v86_v9 }
  0x92   :  { %130 = vrot.lane.b32.xlu0 %v84_v7, %s2031_s18 }
  0x93   :  { %v276_v40 = vunpack.c.l.b16 %v150_v39  ;;  %v1903_v39 = vld [vmem:[%s2620_s2 + $0x7] ss:$0 sm:$0xff] }
  0x95   :  { %v2182_v41 = vpack.c.b16 %v276_v40, %v276_v40 }
  0x99   :  { %143 = vrot.lane.b32.xlu2 %v86_v9, %s2029_s17  ;;  %v122_v9 = vpack.c.bf16 %v2158_v30, %v2158_v30 }
  0xa1   :  { %99 = vrot.lane.b32.xlu2 %v2138_v10, %s2030_s0 }
  0xeb   :  { %v141_v19 = vpop.permute.xlu2 %140 }
  0xec   :  { %v152_v23 = vpack.c.bf16 %v141_v19, %v141_v19 }
  0xee   :  { %v324_v27 = vunpack.c.l.b16 %v152_v23 }
  0xf0   :  { %v2156_v29 = vpack.c.b16 %v324_v27, %v324_v27 }
  0xf3   :  { %v144_v32 = vpop.permute.xlu2 %143 }
  0xf4   :  { %v153_v34 = vpack.c.bf16 %v144_v32, %v144_v32  ;;  %v1902_v32 = vld [vmem:[%s2620_s2] ss:$0 sm:$0xff] }
  0xf6   :  { %v348_v36 = vunpack.c.l.b16 %v153_v34 }
  0xf8   :  { %v2176_v38 = vpack.c.b16 %v348_v36, %v348_v36 }
  0xfb   :  { %v134_v11 = vpop.permute.xlu1 %133  ;;  %v128_v12 = vpop.permute.xlu0 %127 }
  0xfc   :  { %v147_v13 = vpack.c.bf16 %v128_v12, %v128_v12  ;;  %v149_v25 = vpack.c.bf16 %v134_v11, %v134_v11  ;;  %v100_v42 = vpop.permute.xlu2 %99  ;;  %v1897_v11 = vld [vmem:[%s2620_s2 + $0x1] ss:$0 sm:$0xff] }
  0xfd   :  { %v119_v47 = vpack.c.bf16 %v100_v42, %v100_v42 }
  0xfe   :  { %v204_v14 = vunpack.c.l.b16 %v147_v13  ;;  %v252_v28 = vunpack.c.l.b16 %v149_v25 }
 0x100   :  { %v2142_v15 = vpack.c.b16 %v204_v14, %v204_v14  ;;  %v2160_v31 = vpack.c.b16 %v252_v28, %v252_v28  ;;  %v1898_v14 = vld [vmem:[%s2620_s2 + $0x2] ss:$0 sm:$0xff] }
 0x102   :  { %206 = vrot.lane.b32.xlu0 %v2142_v15, %s2032_s19 }
 0x103   :  { %v138_v16 = vpop.permute.xlu1 %137 }
 0x104   :  { %v151_v17 = vpack.c.bf16 %v138_v16, %v138_v16  ;;  %v131_v18 = vpop.permute.xlu0 %130 }
 0x105   :  { %v148_v20 = vpack.c.bf16 %v131_v18, %v131_v18 }
 0x106   :  { %v300_v21 = vunpack.c.l.b16 %v151_v17 }
 0x107   :  { %v228_v22 = vunpack.c.l.b16 %v148_v20 }
 0x108   :  { %v2146_v24 = vpack.c.b16 %v300_v21, %v300_v21  ;;  %v1900_v21 = vld [vmem:[%s2620_s2 + $0x5] ss:$0 sm:$0xff] }
 0x109   :  { %v2148_v26 = vpack.c.b16 %v228_v22, %v228_v22 }
 0x10a   :  { %102 = vrot.lane.b32.xlu0 %v2138_v10, %s2031_s18  ;;  %302 = vrot.lane.b32.xlu2 %v2146_v24, %s2032_s19 }
 0x10b   :  { %230 = vrot.lane.b32.xlu1 %v2148_v26, %s2032_s19 }
 0x112   :  { %326 = vrot.lane.b32.xlu0 %v2156_v29, %s2032_s19  ;;  %109 = vrot.lane.b32.xlu2 %v2158_v30, %s2030_s0 }
 0x113   :  { %254 = vrot.lane.b32.xlu1 %v2160_v31, %s2032_s19 }
 0x11a   :  { %112 = vrot.lane.b32.xlu0 %v2158_v30, %s2031_s18  ;;  %115 = vrot.lane.b32.xlu2 %v2158_v30, %s2029_s17  ;;  %v1901_v30 = vld [vmem:[%s2620_s2 + $0x6] ss:$0 sm:$0xff] }
 0x11b   :  { %105 = vrot.lane.b32.xlu1 %v2138_v10, %s2029_s17 }
 0x122   :  { %181 = vrot.lane.b32.xlu0 %v2174_v37, %s2032_s19 }
 0x123   :  { %350 = vrot.lane.b32.xlu1 %v2176_v38, %s2032_s19 }
 0x12b   :  { %278 = vrot.lane.b32.xlu1 %v2182_v41, %s2032_s19 }
 0x164   :  { %v303_v43 = vpop.permute.xlu2 %302 }
 0x165   :  { %v308_v46 = vsel %vm183_vm1, %v303_v43, 0  ;;  %v1899_v43 = vld [vmem:[%s2620_s2 + $0x3] ss:$0 sm:$0xff] }
 0x16c   :  { %v110_v56 = vpop.permute.xlu2 %109 }
 0x16d   :  { %v123_v57 = vpack.c.bf16 %v110_v56, %v110_v56 }
 0x174   :  { %v207_v44 = vpop.permute.xlu0 %206  ;;  %v116_v4 = vpop.permute.xlu2 %115 }
 0x175   :  { %v212_v45 = vsel %vm183_vm1, %v207_v44, 0  ;;  %v125_v7 = vpack.c.bf16 %v116_v4, %v116_v4 }
 0x176   :  { %221 = vmatpush.bf16.xpose.msra.mxu2 %v212_v45 }
 0x17c   :  { %v103_v48 = vpop.permute.xlu0 %102 }
 0x17d   :  { %v231_v49 = vpop.permute.xlu1 %230  ;;  %1715 = vmatmul.msk.bf16.vlgmr.msra.gmra.mxu2 %vm183_vm1, %v119_v47  ;;  %v120_v51 = vpack.c.bf16 %v103_v48, %v103_v48 }
 0x17e   :  { %317 = vmatpush.bf16.xpose.msrb.mxu2 %v308_v46  ;;  %v236_v50 = vsel %vm183_vm1, %v231_v49, 0 }
 0x17f   :  { %245 = vmatpush.bf16.xpose.msra.mxu3 %v236_v50 }
 0x184   :  { %v327_v52 = vpop.permute.xlu0 %326 }
 0x185   :  { %v255_v53 = vpop.permute.xlu1 %254  ;;  %v332_v54 = vsel %vm183_vm1, %v327_v52, 0 }
 0x186   :  { %1716 = vmatmul.msk.bf16.vlgmr.msra.gmra.mxu3 %vm183_vm1, %v120_v51  ;;  %v260_v55 = vsel %vm183_vm1, %v255_v53, 0  ;;  %v1904_v53 = vld [vmem:[%s2620_s2 + $0x4] ss:$0 sm:$0xff]  ;;  %s2034_s2 = smov 8  }
 0x187   :  { %269 = vmatpush.bf16.xpose.msrb.mxu0 %v260_v55  ;;  %341 = vmatpush.bf16.xpose.msrb.mxu3 %v332_v54 }
 0x18c   :  { %v113_v58 = vpop.permute.xlu0 %112 }
 0x18d   :  { %v106_v59 = vpop.permute.xlu1 %105  ;;  %1719 = vmatmul.msk.bf16.vlgmr.msrb.gmra.mxu2 %vm183_vm1, %v123_v57  ;;  %v124_v61 = vpack.c.bf16 %v113_v58, %v113_v58 }
 0x18e   :  { %v121_v60 = vpack.c.bf16 %v106_v59, %v106_v59 }
 0x190   :  { %1717 = vmatmul.msk.bf16.vlgmr.msrb.gmra.mxu0 %vm183_vm1, %v121_v60 }
 0x194   :  { %v182_v62 = vpop.permute.xlu0 %181 }
 0x195   :  { %v351_v63 = vpop.permute.xlu1 %350  ;;  %v188_v0 = vsel %vm183_vm1, %v182_v62, 0 }
 0x196   :  { %v356_v1 = vsel %vm183_vm1, %v351_v63, 0  ;;  %1720 = vmatmul.msk.bf16.vlgmr.msrb.gmra.mxu3 %vm183_vm1, %v124_v61  ;;  %197 = vmatpush.bf16.xpose.msra.mxu1 %v188_v0 }
 0x197   :  { %365 = vmatpush.bf16.xpose.msra.mxu0 %v356_v1 }
 0x19d   :  { %v279_v6 = vpop.permute.xlu1 %278  ;;  %1714 = vmatmul.msk.bf16.vlgmr.msra.gmra.mxu1 %vm183_vm1, %v118_v5 }
 0x19e   :  { %v284_v8 = vsel %vm183_vm1, %v279_v6, 0 }
 0x19f   :  { %293 = vmatpush.bf16.xpose.msrb.mxu1 %v284_v8 }
 0x1a0   :  { %1721 = vmatmul.msk.bf16.vlgmr.msra.gmra.mxu0 %vm183_vm1, %v125_v7 }
 0x1ad   :  { %1718 = vmatmul.msk.bf16.vlgmr.msrb.gmra.mxu1 %vm183_vm1, %v122_v9 }
 0x200   :  { %v223_v12 = vpop.f32.mrf.mxu2 }
 0x201   :  { %v224_v10 = vadd.f32 %v1897_v11, %v223_v12 }
 0x203   :  { %v374_v13 = vsel %vm183_vm1, %v224_v10, -inf }
 0x204   :  { %375 = vmax.xlane.f32.xlu2 %v374_v13 }
 0x208   :  { %v225_v16 = vpop.f32.mrf.mxu2 }
 0x209   :  { %v247_v17 = vpop.f32.mrf.mxu3 }
 0x20a   :  { %v248_v18 = vadd.f32 %v1898_v14, %v247_v17 }
 0x20c   :  { %v377_v19 = vsel %vm183_vm1, %v248_v18, -inf }
 0x20d   :  { %v271_v20 = vpop.f32.mrf.mxu0  ;;  %378 = vmax.xlane.f32.xlu0 %v377_v19 }
 0x20e   :  { %v272_v48 = vadd.f32 %v1899_v43, %v271_v20 }
 0x210   :  { %v319_v22 = vpop.f32.mrf.mxu2  ;;  %v380_v52 = vsel %vm183_vm1, %v272_v48, -inf }
 0x211   :  { %v249_v23 = vpop.f32.mrf.mxu3  ;;  %v320_v25 = vadd.f32 %v1900_v21, %v319_v22 }
 0x213   :  { %v386_v27 = vsel %vm183_vm1, %v320_v25, -inf }
 0x214   :  { %387 = vmax.xlane.f32.xlu2 %v386_v27 }
 0x215   :  { %v273_v28 = vpop.f32.mrf.mxu0 }
 0x218   :  { %v321_v33 = vpop.f32.mrf.mxu2 }
 0x219   :  { %v343_v34 = vpop.f32.mrf.mxu3 }
 0x21a   :  { %v2224_v35 = vadd.f32 %v1901_v30, %v343_v34  ;;  %v199_v36 = vpop.f32.mrf.mxu1 }
 0x21b   :  { %v2229_v40 = vadd.f32 %v1902_v32, %v199_v36 }
 0x21c   :  { %v389_v42 = vsel %vm183_vm1, %v2224_v35, -inf }
 0x21d   :  { %390 = vmax.xlane.f32.xlu2 %v389_v42  ;;  %v367_v44 = vpop.f32.mrf.mxu0  ;;  %v371_v45 = vsel %vm183_vm1, %v2229_v40, -inf }
 0x21e   :  { %v2238_v46 = vadd.f32 %v1903_v39, %v367_v44  ;;  %372 = vmax.xlane.f32.xlu1 %v371_v45 }
 0x220   :  { %v392_v47 = vsel %vm183_vm1, %v2238_v46, -inf }
 0x221   :  { %v345_v49 = vpop.f32.mrf.mxu3  ;;  %393 = vmax.xlane.f32.xlu0 %v392_v47 }
 0x222   :  { %v201_v50 = vpop.f32.mrf.mxu1 }
 0x225   :  { %v369_v51 = vpop.f32.mrf.mxu0 }
 0x226   :  { %381 = vmax.xlane.f32.xlu1 %v380_v52 }
 0x22a   :  { %v295_v54 = vpop.f32.mrf.mxu1 }
 0x22b   :  { %v2246_v55 = vadd.f32 %v1904_v53, %v295_v54 }
 0x22d   :  { %v383_v56 = vsel %vm183_vm1, %v2246_v55, -inf }
 0x22e   :  { %384 = vmax.xlane.f32.xlu0 %v383_v56 }
 0x232   :  { %v297_v57 = vpop.f32.mrf.mxu1 }
 0x242   :  { %531 = vrot.lane.b32.xlu0 %v2160_v31, %s2033_s21 }
 0x24a   :  { %573 = vrot.lane.b32.xlu0 %v2146_v24, %s2033_s21 }
 0x252   :  { %594 = vrot.lane.b32.xlu0 %v2156_v29, %s2033_s21 }
 0x277   :  { %v376_v58 = vpop.xlane.xlu2 %375 }
 0x278   :  { %v396_v59 = vsub.f32 %v224_v10, %v376_v58 }
 0x27a   :  { %v405_v60 = vmul.f32 1.442695, %v396_v59 }
 0x27c   :  { %1925 = vpow2.f32 %v405_v60 }
 0x280   :  { %v379_v61 = vpop.xlane.xlu0 %378 }
 0x281   :  { %v397_v62 = vsub.f32 %v248_v18, %v379_v61 }
 0x282   :  { %v2256_v63 = vpop.eup %1925 }
 0x283   :  { %v407_v0 = vmul.f32 1.442695, %v397_v62  ;;  %v422_v1 = vsel %vm183_vm1, %v2256_v63, 0.0 }
 0x284   :  { %423 = vadd.xlane.f32.xlu2 %v422_v1 }
 0x285   :  { %1927 = vpow2.f32 %v407_v0 }
 0x287   :  { %v388_v31 = vpop.xlane.xlu2 %387 }
 0x288   :  { %v400_v4 = vsub.f32 %v320_v25, %v388_v31 }
 0x28a   :  { %v413_v24 = vmul.f32 1.442695, %v400_v4 }
 0x28b   :  { %v2260_v5 = vpop.eup %1927 }
 0x28c   :  { %1929 = vpow2.f32 %v413_v24  ;;  %v425_v29 = vsel %vm183_vm1, %v2260_v5, 0.0 }
 0x28d   :  { %426 = vadd.xlane.f32.xlu0 %v425_v29 }
 0x290   :  { %v391_v17 = vpop.xlane.xlu2 %390 }
 0x291   :  { %v373_v6 = vpop.xlane.xlu1 %372  ;;  %v401_v18 = vsub.f32 %v2224_v35, %v391_v17 }
 0x292   :  { %v2264_v7 = vpop.eup %1929  ;;  %v395_v22 = vsub.f32 %v2229_v40, %v373_v6 }
 0x293   :  { %v434_v8 = vsel %vm183_vm1, %v2264_v7, 0.0 }
 0x294   :  { %v394_v13 = vpop.xlane.xlu0 %393  ;;  %v403_v23 = vmul.f32 1.442695, %v395_v22 }
 0x295   :  { %435 = vadd.xlane.f32.xlu0 %v434_v8  ;;  %v402_v28 = vsub.f32 %v2238_v46, %v394_v13 }
 0x297   :  { %v417_v30 = vmul.f32 1.442695, %v402_v28 }
 0x299   :  { %v382_v9 = vpop.xlane.xlu1 %381 }
 0x29a   :  { %v398_v11 = vsub.f32 %v272_v48, %v382_v9 }
 0x29c   :  { %v409_v12 = vmul.f32 1.442695, %v398_v11  ;;  %489 = vrot.lane.b32.xlu2 %v2142_v15, %s2033_s21  ;;  %v415_v15 = vmul.f32 1.442695, %v401_v18 }
 0x29e   :  { %1931 = vpow2.f32 %v409_v12 }
 0x29f   :  { %1933 = vpow2.f32 %v415_v15 }
 0x2a0   :  { %1935 = vpow2.f32 %v403_v23 }
 0x2a1   :  { %v385_v16 = vpop.xlane.xlu0 %384  ;;  %1937 = vpow2.f32 %v417_v30 }
 0x2a4   :  { %v2270_v10 = vpop.eup %1931 }
 0x2a5   :  { %v428_v14 = vsel %vm183_vm1, %v2270_v10, 0.0  ;;  %v2280_v21 = vpop.eup %1933 }
 0x2a6   :  { %429 = vadd.xlane.f32.xlu1 %v428_v14  ;;  %v2285_v25 = vpop.eup %1935 }
 0x2a7   :  { %v419_v27 = vsel %vm183_vm1, %v2285_v25, 0.0  ;;  %v2293_v33 = vpop.eup %1937 }
 0x2a8   :  { %v440_v34 = vsel %vm183_vm1, %v2293_v33, 0.0 }
 0x2a9   :  { %615 = vrot.lane.b32.xlu0 %v2176_v38, %s2033_s21  ;;  %v437_v38 = vsel %vm183_vm1, %v2280_v21, 0.0 }
 0x2b4   :  { %v532_v19 = vpop.permute.xlu0 %531 }
 0x2b5   :  { %v537_v20 = vsel %vm472_vm2, %v532_v19, 0 }
 0x2b6   :  { %546 = vmatpush.bf16.msrb.mxu0 %v537_v20 }
 0x2bc   :  { %v574_v36 = vpop.permute.xlu0 %573 }
 0x2bd   :  { %v579_v47 = vsel %vm472_vm2, %v574_v36, 0 }
 0x2bf   :  { %510 = vrot.lane.b32.xlu1 %v2148_v26, %s2033_s21  ;;  %v399_v26 = vsub.f32 %v2246_v55, %v385_v16 }
 0x2c1   :  { %v411_v32 = vmul.f32 1.442695, %v399_v26 }
 0x2c3   :  { %1939 = vpow2.f32 %v411_v32 }
 0x2c5   :  { %438 = vadd.xlane.f32.xlu2 %v437_v38 }
 0x2c9   :  { %v2297_v35 = vpop.eup %1939 }
 0x2ca   :  { %v431_v39 = vsel %vm183_vm1, %v2297_v35, 0.0 }
 0x2d3   :  { %420 = vadd.xlane.f32.xlu0 %v419_v27 }
 0x2dd   :  { %467 = vrot.lane.b32.xlu2 %v2174_v37, %s2033_s21  ;;  %v595_v37 = vpop.permute.xlu0 %594 }
 0x2de   :  { %v600_v62 = vsel %vm472_vm2, %v595_v37, 0 }
 0x2e9   :  { %441 = vadd.xlane.f32.xlu1 %v440_v34 }
 0x2f1   :  { %432 = vadd.xlane.f32.xlu1 %v431_v39 }
 0x2f7   :  { %v424_v40 = vpop.xlane.xlu2 %423 }
 0x2f8   :  { %1941 = vrcp.f32 %v424_v40 }
 0x2fe   :  { %v1942_v42 = vpop.eup %1941 }
 0x2ff   :  { %v452_v43 = vmul.f32 %v1942_v42, %v2256_v63  ;;  %v490_v44 = vpop.permute.xlu2 %489  ;;  %v1812_v42 = vld [vmem:[%s2623_s5 + $0x8] sm:$0xff] }
 0x300   :  { %v495_v45 = vsel %vm472_vm2, %v490_v44, 0  ;;  %v427_v46 = vpop.xlane.xlu0 %426 }
 0x301   :  { %v460_v48 = vpack.c.bf16 %v452_v43, %v452_v43  ;;  %504 = vmatpush.bf16.msra.mxu2 %v495_v45  ;;  %v1811_v43 = vld [vmem:[%s2623_s5] sm:$0xff] }
 0x304   :  { %1723 = vmatmul.msk.bf16.vlgmr.msra.gmra.mxu2 %vm183_vm1, %v460_v48 }
 0x305   :  { %588 = vmatpush.bf16.msrb.mxu2 %v579_v47 }
 0x308   :  { %v436_v49 = vpop.xlane.xlu0 %435 }
 0x309   :  { %1943 = vrcp.f32 %v436_v49 }
 0x30a   :  { %552 = vrot.lane.b32.xlu1 %v2182_v41, %s2033_s21 }
 0x30f   :  { %v1944_v50 = vpop.eup %1943 }
 0x310   :  { %v456_v51 = vmul.f32 %v1944_v50, %v2264_v7 }
 0x312   :  { %v464_v52 = vpack.c.bf16 %v456_v51, %v456_v51 }
 0x314   :  { %1727 = vmatmul.msk.bf16.vlgmr.msrb.gmra.mxu2 %vm183_vm1, %v464_v52 }
 0x319   :  { %v430_v53 = vpop.xlane.xlu1 %429 }
 0x31a   :  { %1945 = vrcp.f32 %v430_v53 }
 0x31b   :  { %v616_v54 = vpop.permute.xlu0 %615  ;;  %1947 = vrcp.f32 %v427_v46 }
 0x31c   :  { %v621_v55 = vsel %vm472_vm2, %v616_v54, 0 }
 0x31d   :  { %630 = vmatpush.bf16.msra.mxu0 %v621_v55 }
 0x320   :  { %v1946_v56 = vpop.eup %1945 }
 0x321   :  { %v454_v57 = vmul.f32 %v1946_v56, %v2270_v10  ;;  %v1948_v41 = vpop.eup %1947 }
 0x322   :  { %v453_v59 = vmul.f32 %v1948_v41, %v2260_v5 }
 0x323   :  { %v462_v58 = vpack.c.bf16 %v454_v57, %v454_v57 }
 0x324   :  { %v461_v63 = vpack.c.bf16 %v453_v59, %v453_v59  ;;  %v1816_v59 = vld [vmem:[%s2625_s7 + $0x8] sm:$0xff] }
 0x325   :  { %1725 = vmatmul.msk.bf16.vlgmr.msrb.gmra.mxu0 %vm183_vm1, %v462_v58 }
 0x331   :  { %v511_v60 = vpop.permute.xlu1 %510 }
 0x332   :  { %v516_v61 = vsel %vm472_vm2, %v511_v60, 0  ;;  %v1905_v60 = vld [vmem:[%s2629_s11 + $0x1] ss:$0 sm:$0xff] }
 0x333   :  { %525 = vmatpush.bf16.msra.mxu3 %v516_v61 }
 0x336   :  { %1724 = vmatmul.msk.bf16.vlgmr.msra.gmra.mxu3 %vm183_vm1, %v461_v63 }
 0x337   :  { %609 = vmatpush.bf16.msrb.mxu3 %v600_v62 }
 0x338   :  { %v439_v0 = vpop.xlane.xlu2 %438 }
 0x339   :  { %1949 = vrcp.f32 %v439_v0 }
 0x33b   :  { %833 = vmatpush.bf16.msra.mxu3 %v1816_v59 }
 0x33f   :  { %v1950_v1 = vpop.eup %1949 }
 0x340   :  { %v457_v31 = vmul.f32 %v1950_v1, %v2280_v21  ;;  %v468_v4 = vpop.permute.xlu2 %467 }
 0x341   :  { %v474_v24 = vsel %vm472_vm2, %v468_v4, 0 }
 0x342   :  { %483 = vmatpush.bf16.msra.mxu1 %v474_v24  ;;  %v465_v5 = vpack.c.bf16 %v457_v31, %v457_v31 }
 0x346   :  { %v421_v29 = vpop.xlane.xlu0 %420  ;;  %1728 = vmatmul.msk.bf16.vlgmr.msrb.gmra.mxu3 %vm183_vm1, %v465_v5  ;;  %v1815_v5 = vld [vmem:[%s2625_s7] sm:$0xff] }
 0x347   :  { %1951 = vrcp.f32 %v421_v29  ;;  %v47_v29 = vld [vmem:[%s2619_s1] sm:$0xff]  ;;  %834 = vmatpush.bf16.msra.mxu3 %v1815_v5 }
 0x34d   :  { %v1952_v6 = vpop.eup %1951 }
 0x34e   :  { %v451_v7 = vmul.f32 %v1952_v6, %v2285_v25 }
 0x350   :  { %v459_v8 = vpack.c.bf16 %v451_v7, %v451_v7  ;;  %v2037_v7 = vmov 32.0  }
 0x352   :  { %1722 = vmatmul.msk.bf16.vlgmr.msra.gmra.mxu1 %vm183_vm1, %v459_v8 }
 0x35c   :  { %v442_v9 = vpop.xlane.xlu1 %441 }
 0x35d   :  { %1953 = vrcp.f32 %v442_v9 }
 0x363   :  { %v1954_v11 = vpop.eup %1953 }
 0x364   :  { %v458_v12 = vmul.f32 %v1954_v11, %v2293_v33  ;;  %v433_v13 = vpop.xlane.xlu1 %432 }
 0x365   :  { %1955 = vrcp.f32 %v433_v13 }
 0x366   :  { %v466_v10 = vpack.c.bf16 %v458_v12, %v458_v12  ;;  %1957 = vrcp.f32 %v2037_v7 }
 0x368   :  { %1729 = vmatmul.msk.bf16.vlgmr.msra.gmra.mxu0 %vm183_vm1, %v466_v10 }
 0x36b   :  { %v1956_v14 = vpop.eup %1955 }
 0x36c   :  { %v455_v16 = vmul.f32 %v1956_v14, %v2297_v35 }
 0x36e   :  { %v463_v19 = vpack.c.bf16 %v455_v16, %v455_v16 }
 0x37c   :  { %v553_v17 = vpop.permute.xlu1 %552 }
 0x37d   :  { %v558_v18 = vsel %vm472_vm2, %v553_v17, 0 }
 0x37e   :  { %567 = vmatpush.bf16.msrb.mxu1 %v558_v18 }
 0x381   :  { %1726 = vmatmul.msk.bf16.vlgmr.msrb.gmra.mxu1 %vm183_vm1, %v463_v19 }
 0x382   :  { %696 = vmatpush.bf16.msra.mxu1 %v1812_v42 }
 0x386   :  { %697 = vmatpush.bf16.msra.mxu1 %v1811_v43 }
 0x387   :  { %v506_v20 = vpop.f32.mrf.mxu2 }
 0x38f   :  { %v508_v15 = vpop.f32.mrf.mxu2 }
 0x397   :  { %v590_v21 = vpop.f32.mrf.mxu2 }
 0x398   :  { %v1836_v22 = vpack.i.bf16 %v590_v21, %v506_v20 }
 0x39a   :  { %1837 = vrot.lane.b32.xlu2 %v1836_v22, %s2034_s2 }
 0x39f   :  { %v592_v38 = vpop.f32.mrf.mxu2 }
 0x3a0   :  { %v49_v38 = vld [vmem:[%s2619_s1 + $0x10] sm:$0xff] }
 0x3a2   :  { %v548_v23 = vpop.f32.mrf.mxu0 }
 0x3aa   :  { %v550_v25 = vpop.f32.mrf.mxu0 }
 0x3b9   :  { %v527_v27 = vpop.f32.mrf.mxu3 }
 0x3c1   :  { %v529_v28 = vpop.f32.mrf.mxu3 }
 0x3c2   :  { %v1814_v28 = vld [vmem:[%s2624_s6 + $0x8] sm:$0xff] }
 0x3c3   :  { %793 = vmatpush.bf16.msra.mxu2 %v1814_v28 }
 0x3c9   :  { %v611_v30 = vpop.f32.mrf.mxu3 }
 0x3ca   :  { %v1841_v26 = vpack.i.bf16 %v611_v30, %v527_v27 }
 0x3cc   :  { %1842 = vrot.lane.b32.xlu2 %v1841_v26, %s2035_s22  ;;  %v1908_v26 = vld [vmem:[%s2629_s11 + $0x3] ss:$0 sm:$0xff] }
 0x3cf   :  { %v485_v32 = vpop.f32.mrf.mxu1 }
 0x3d1   :  { %v613_v33 = vpop.f32.mrf.mxu3 }
 0x3d7   :  { %v487_v34 = vpop.f32.mrf.mxu1 }
 0x3e5   :  { %v632_v35 = vpop.f32.mrf.mxu0 }
 0x3e6   :  { %v1846_v36 = vpack.i.bf16 %v632_v35, %v548_v23  ;;  %v50_v23 = vld [vmem:[%s2619_s1 + $0x18] sm:$0xff] }
 0x3e7   :  { %v803_v25 = vpack.c.bf16 %v50_v23, %v49_v38 }
 0x3e8   :  { %1847 = vrot.lane.b32.xlu1 %v1846_v36, %s2036_s23 }
 0x3ed   :  { %v634_v39 = vpop.f32.mrf.mxu0 }
 0x3ee   :  { %v1813_v39 = vld [vmem:[%s2624_s6] sm:$0xff] }
 0x3ef   :  { %794 = vmatpush.bf16.msra.mxu2 %v1813_v39 }
 0x3f4   :  { %v1838_v44 = vpop.permute.xlu2 %1837 }
 0x3f5   :  { %v1839_v46 = vunpack.i.l.bf16 %v1838_v44  ;;  %v1840_v49 = vunpack.i.h.bf16 %v1838_v44 }
 0x3f7   :  { %v648_v51 = vsel %vm183_vm1, %v485_v32, %v1839_v46 }
 0x3fe   :  { %v569_v40 = vpop.f32.mrf.mxu1 }
 0x3ff   :  { %v665_v52 = vsel %vm183_vm1, %v569_v40, %v1840_v49 }
 0x406   :  { %v571_v37 = vpop.f32.mrf.mxu1 }
 0x426   :  { %v1843_v45 = vpop.permute.xlu2 %1842 }
 0x427   :  { %v1845_v47 = vunpack.i.h.bf16 %v1843_v45  ;;  %v1844_v48 = vunpack.i.l.bf16 %v1843_v45 }
 0x429   :  { %v650_v55 = vsel %vm649_vm3, %v648_v51, %v1844_v48  ;;  %v666_v56 = vsel %vm649_vm3, %v665_v52, %v1845_v47 }
 0x45a   :  { %v1848_v50 = vpop.permute.xlu1 %1847 }
 0x45b   :  { %v1850_v53 = vunpack.i.h.bf16 %v1848_v50  ;;  %v1849_v54 = vunpack.i.l.bf16 %v1848_v50 }
 0x45d   :  { %v667_v57 = vsel %vm651_vm4, %v666_v56, %v1850_v53  ;;  %v652_v58 = vsel %vm651_vm4, %v650_v55, %v1849_v54 }
 0x45e   :  { %v669_v41 = vpack.c.bf16 %v667_v57, %v652_v58 }
 0x460   :  { %1738 = vmatmul.msk.bf16.vlgmr.msra.gmra.mxu1 %vm70_vm0, %v669_v41 }
 0x4dd   :  { %v699_v61 = vpop.f32.mrf.mxu1 }
 0x4de   :  { %v700_v62 = vadd.f32 %v1905_v60, %v699_v61  ;;  %v1906_v61 = vld [vmem:[%s2629_s11 + $0x7] ss:$0 sm:$0xff] }
 0x4e0   :  { %v706_v63 = vadd.f32 %v700_v62, %v2119_v2  ;;  %v48_v2 = vld [vmem:[%s2619_s1 + $0x8] sm:$0xff] }
 0x4e1   :  { %v802_v6 = vpack.c.bf16 %v48_v2, %v47_v29 }
 0x4e2   :  { %v708_v0 = vsel %vm70_vm0, %v706_v63, 0.0 }
 0x4e3   :  { %709 = vadd.xlane.f32.xlu0 %v708_v0  ;;  %1756 = vmatmul.msk.bf16.vlgmr.msra.gmra.mxu3 %vm70_vm0, %v802_v6 }
 0x4e5   :  { %v701_v1 = vpop.f32.mrf.mxu1 }
 0x4e6   :  { %v702_v31 = vadd.f32 %v1905_v60, %v701_v1  ;;  %v1907_v1 = vld [vmem:[%s2629_s11 + $0x8] ss:$0 sm:$0xff] }
 0x4e8   :  { %v707_v4 = vadd.f32 %v702_v31, %v2124_v3  ;;  %v1958_v3 = vpop.eup %1957 }
 0x4e9   :  { %v715_v8 = vmul.f32 32.0, %v1958_v3  ;;  %vm719_vm5 = vweird.f32 %v1958_v3 }
 0x4ea   :  { %v711_v24 = vsel %vm70_vm0, %v707_v4, 0.0 }
 0x4eb   :  { %712 = vadd.xlane.f32.xlu2 %v711_v24  ;;  %v716_v9 = vsub.f32 1.0, %v715_v8 }
 0x4ed   :  { %v717_v11 = vmul.f32 %v1958_v3, %v716_v9 }
 0x4ef   :  { %v718_v12 = vadd.f32 %v1958_v3, %v717_v11 }
 0x4f1   :  { %v2362_v10 = vsel %vm719_vm5, %v1958_v3, %v718_v12 }
 0x4f3   :  { %1757 = vmatmul.msk.bf16.gmra.mxu3 %vm70_vm0, %v803_v25 }
 0x556   :  { %v710_v13 = vpop.xlane.xlu0 %709 }
 0x557   :  { %v721_v14 = vmul.f32 %v2362_v10, %v710_v13 }
 0x559   :  { %v723_v16 = vsub.f32 %v706_v63, %v721_v14 }
 0x55b   :  { %v725_v17 = vmul.f32 %v723_v16, %v723_v16 }
 0x55d   :  { %v727_v18 = vsel %vm70_vm0, %v725_v17, 0.0 }
 0x55e   :  { %v713_v19 = vpop.xlane.xlu2 %712  ;;  %728 = vadd.xlane.f32.xlu1 %v727_v18 }
 0x55f   :  { %v722_v20 = vmul.f32 %v2362_v10, %v713_v19 }
 0x561   :  { %v724_v15 = vsub.f32 %v707_v4, %v722_v20 }
 0x563   :  { %v726_v21 = vmul.f32 %v724_v15, %v724_v15 }
 0x565   :  { %v730_v22 = vsel %vm70_vm0, %v726_v21, 0.0 }
 0x566   :  { %731 = vadd.xlane.f32.xlu0 %v730_v22  ;;  %v836_v27 = vpop.f32.mrf.mxu3 }
 0x567   :  { %v837_v34 = vadd.f32 %v1908_v26, %v836_v27 }
 0x569   :  { %v924_v37 = vpack.c.bf16 %v837_v34, %v837_v34 }
 0x56b   :  { %v966_v45 = vunpack.c.l.b16 %v924_v37 }
 0x56e   :  { %v838_v33 = vpop.f32.mrf.mxu3 }
 0x56f   :  { %v839_v35 = vadd.f32 %v1908_v26, %v838_v33 }
 0x571   :  { %v1851_v40 = vpack.i.bf16 %v839_v35, %v837_v34  ;;  %v925_v42 = vpack.c.bf16 %v839_v35, %v839_v35 }
 0x573   :  { %v967_v46 = vunpack.c.l.b16 %v925_v42 }
 0x575   :  { %v2387_v49 = vpack.c.b16 %v967_v46, %v966_v45  ;;  %v1909_v45 = vld [vmem:[%s2629_s11 + $0x2] ss:$0 sm:$0xff] }
 0x576   :  { %v841_v6 = vpop.f32.mrf.mxu3 }
 0x577   :  { %v973_v51 = vsel %vm183_vm1, %v2387_v49, 0  ;;  %v842_v3 = vadd.f32 %v1908_v26, %v841_v6 }
 0x578   :  { %982 = vmatpush.bf16.xpose.msrb.mxu0 %v973_v51 }
 0x579   :  { %v932_v12 = vpack.c.bf16 %v842_v3, %v842_v3 }
 0x57a   :  { %1852 = vrot.lane.b32.xlu0 %v1851_v40, %s2031_s18 }
 0x57e   :  { %v843_v8 = vpop.f32.mrf.mxu3 }
 0x57f   :  { %v844_v9 = vadd.f32 %v1908_v26, %v843_v8 }
 0x581   :  { %v1871_v11 = vpack.i.bf16 %v844_v9, %v842_v3  ;;  %v933_v13 = vpack.c.bf16 %v844_v9, %v844_v9 }
 0x582   :  { %1857 = vrot.lane.b32.xlu0 %v1851_v40, %s2030_s0 }
 0x583   :  { %1872 = vrot.lane.b32.xlu1 %v1871_v11, %s2030_s0  ;;  %v1063_v17 = vunpack.c.l.b16 %v933_v13 }
 0x58a   :  { %1867 = vrot.lane.b32.xlu0 %v1851_v40, %s2029_s17 }
 0x592   :  { %914 = vrot.lane.b32.xlu0 %v844_v9, %s2031_s18 }
 0x5d1   :  { %v729_v30 = vpop.xlane.xlu1 %728 }
 0x5d2   :  { %v733_v32 = vmul.f32 %v729_v30, %v2362_v10 }
 0x5d4   :  { %v735_v36 = vadd.f32 1e-05, %v733_v32 }
 0x5d6   :  { %1959 = vrsqrt.f32 %v735_v36  ;;  %vm743_vm7 = vweird.f32 %v735_v36 }
 0x5d9   :  { %v732_v43 = vpop.xlane.xlu0 %731 }
 0x5da   :  { %v734_v44 = vmul.f32 %v732_v43, %v2362_v10 }
 0x5dc   :  { %v1960_v47 = vpop.eup %1959  ;;  %v736_v48 = vadd.f32 1e-05, %v734_v44 }
 0x5dd   :  { %v738_v50 = vmul.f32 %v1960_v47, %v735_v36  ;;  %vm744_vm6 = vweird.f32 %v1960_v47 }
 0x5de   :  { %1961 = vrsqrt.f32 %v736_v48  ;;  %vm745_vm8 = vmor %vm743_vm7, %vm744_vm6  ;;  %vm753_vm10 = vweird.f32 %v736_v48 }
 0x5df   :  { %v739_v52 = vmul.f32 %v1960_v47, %v738_v50 }
 0x5e1   :  { %v740_v53 = vmul.f32 0.5, %v739_v52 }
 0x5e3   :  { %v741_v54 = vsub.f32 1.5, %v740_v53 }
 0x5e4   :  { %v1962_v55 = vpop.eup %1961 }
 0x5e5   :  { %v742_v56 = vmul.f32 %v1960_v47, %v741_v54  ;;  %v748_v57 = vmul.f32 %v1962_v55, %v736_v48  ;;  %vm754_vm9 = vweird.f32 %v1962_v55 }
 0x5e6   :  { %vm755_vm11 = vmor %vm753_vm10, %vm754_vm9 }
 0x5e7   :  { %v749_v58 = vmul.f32 %v1962_v55, %v748_v57  ;;  %v746_v41 = vsel %vm745_vm8, %v1960_v47, %v742_v56 }
 0x5e8   :  { %v757_v62 = vmul.f32 %v746_v41, %v723_v16  ;;  %v1062_v16 = vunpack.c.l.b16 %v932_v12 }
 0x5e9   :  { %v750_v59 = vmul.f32 0.5, %v749_v58 }
 0x5ea   :  { %v760_v31 = vmul.f32 %v1906_v61, %v757_v62  ;;  %v2408_v21 = vpack.c.b16 %v1063_v17, %v1062_v16 }
 0x5eb   :  { %v751_v60 = vsub.f32 1.5, %v750_v59 }
 0x5ec   :  { %v2399_v5 = vadd.f32 %v1907_v1, %v760_v31  ;;  %v1853_v7 = vpop.permute.xlu0 %1852  ;;  %v1069_v25 = vsel %vm183_vm1, %v2408_v21, 0 }
 0x5ed   :  { %v752_v63 = vmul.f32 %v1962_v55, %v751_v60  ;;  %v1855_v28 = vunpack.i.h.bf16 %v1853_v7  ;;  %v1854_v30 = vunpack.i.l.bf16 %v1853_v7 }
 0x5ef   :  { %v756_v0 = vsel %vm755_vm11, %v1962_v55, %v752_v63  ;;  %v929_v26 = vpack.c.bf16 %v1855_v28, %v1855_v28  ;;  %v928_v32 = vpack.c.bf16 %v1854_v30, %v1854_v30 }
 0x5f0   :  { %v758_v4 = vmul.f32 %v756_v0, %v724_v15 }
 0x5f1   :  { %v1015_v33 = vunpack.c.l.b16 %v929_v26  ;;  %v1014_v34 = vunpack.c.l.b16 %v928_v32 }
 0x5f2   :  { %v761_v24 = vmul.f32 %v1906_v61, %v758_v4 }
 0x5f3   :  { %v2413_v40 = vpack.c.b16 %v1015_v33, %v1014_v34  ;;  %v1910_v33 = vld [vmem:[%s2621_s3] ss:$0 sm:$0xff] }
 0x5f4   :  { %v2401_v29 = vadd.f32 %v1907_v1, %v761_v24  ;;  %v1858_v14 = vpop.permute.xlu0 %1857 }
 0x5f5   :  { %v1860_v18 = vunpack.i.h.bf16 %v1858_v14  ;;  %v1859_v19 = vunpack.i.l.bf16 %v1858_v14  ;;  %v1021_v46 = vsel %vm183_vm1, %v2413_v40, 0  ;;  %v1873_v58 = vpop.permute.xlu1 %1872 }
 0x5f6   :  { %v766_v2 = vpack.c.bf16 %v2401_v29, %v2399_v5  ;;  %1030 = vmatpush.bf16.xpose.msrb.mxu2 %v1021_v46  ;;  %v1875_v41 = vunpack.i.h.bf16 %v1873_v58  ;;  %v1874_v59 = vunpack.i.l.bf16 %v1873_v58  ;;  %v1912_v46 = vld [vmem:[%s2621_s3 + $0x3] ss:$0 sm:$0xff] }
 0x5f7   :  { %v927_v20 = vpack.c.bf16 %v1860_v18, %v1860_v18  ;;  %v926_v15 = vpack.c.bf16 %v1859_v19, %v1859_v19 }
 0x5f8   :  { %1747 = vmatmul.msk.bf16.vlgmr.msra.gmra.mxu2 %vm70_vm0, %v766_v2  ;;  %v935_v60 = vpack.c.bf16 %v1875_v41, %v1875_v41  ;;  %v934_v61 = vpack.c.bf16 %v1874_v59, %v1874_v59 }
 0x5f9   :  { %v991_v22 = vunpack.c.l.b16 %v927_v20  ;;  %v990_v38 = vunpack.c.l.b16 %v926_v15 }
 0x5fa   :  { %v1087_v62 = vunpack.c.l.b16 %v935_v60  ;;  %v1086_v63 = vunpack.c.l.b16 %v934_v61  ;;  %v1914_v61 = vld [vmem:[%s2621_s3 + $0x5] ss:$0 sm:$0xff] }
 0x5fb   :  { %v992_v23 = vpack.c.b16 %v991_v22, %v990_v38 }
 0x5fc   :  { %v1868_v35 = vpop.permute.xlu0 %1867  ;;  %v2433_v0 = vpack.c.b16 %v1087_v62, %v1086_v63  ;;  %v1915_v62 = vld [vmem:[%s2621_s3 + $0x6] ss:$0 sm:$0xff]  ;;  %v1917_v63 = vld [vmem:[%s2621_s3 + $0x7] ss:$0 sm:$0xff] }
 0x5fd   :  { %v997_v27 = vsel %vm183_vm1, %v992_v23, 0  ;;  %v1870_v36 = vunpack.i.h.bf16 %v1868_v35  ;;  %v1869_v39 = vunpack.i.l.bf16 %v1868_v35 }
 0x5fe   :  { %1006 = vmatpush.bf16.xpose.msrb.mxu1 %v997_v27  ;;  %v1093_v1 = vsel %vm183_vm1, %v2433_v0, 0 }
 0x5ff   :  { %v931_v37 = vpack.c.bf16 %v1870_v36, %v1870_v36  ;;  %v930_v42 = vpack.c.bf16 %v1869_v39, %v1869_v39  ;;  %1102 = vmatpush.bf16.xpose.msra.mxu2 %v1093_v1 }
 0x601   :  { %v1039_v43 = vunpack.c.l.b16 %v931_v37  ;;  %v1038_v44 = vunpack.c.l.b16 %v930_v42 }
 0x603   :  { %v2420_v47 = vpack.c.b16 %v1039_v43, %v1038_v44 }
 0x604   :  { %v915_v31 = vpop.permute.xlu0 %914 }
 0x605   :  { %v1045_v50 = vsel %vm183_vm1, %v2420_v47, 0  ;;  %v937_v4 = vpack.c.bf16 %v915_v31, %v915_v31 }
 0x606   :  { %1078 = vmatpush.bf16.xpose.msra.mxu1 %v1069_v25  ;;  %1054 = vmatpush.bf16.xpose.msra.mxu0 %v1045_v50 }
 0x607   :  { %v1111_v7 = vunpack.c.l.b16 %v937_v4 }
 0x67b   :  { %v796_v48 = vpop.f32.mrf.mxu2 }
 0x67c   :  { %v797_v51 = vadd.f32 %v1909_v45, %v796_v48 }
 0x67e   :  { %v854_v52 = vmul.f32 0.35355338, %v797_v51 }
 0x680   :  { %v876_v53 = vpack.c.bf16 %v854_v52, %v854_v52  ;;  %857 = vrot.lane.b32.xlu0 %v854_v52, %s2030_s0  ;;  %v1861_v54 = vpack.i.bf16 %v842_v3, %v854_v52 }
 0x682   :  { %1862 = vrot.lane.b32.xlu2 %v1861_v54, %s2031_s18  ;;  %1758 = vmatmul.msk.bf16.vlgmr.msrb.gmra.mxu0 %vm183_vm1, %v876_v53 }
 0x683   :  { %v798_v55 = vpop.f32.mrf.mxu2 }
 0x684   :  { %v799_v56 = vadd.f32 %v1909_v45, %v798_v55  ;;  %v1911_v45 = vld [vmem:[%s2621_s3 + $0x2] ss:$0 sm:$0xff] }
 0x686   :  { %v855_v57 = vmul.f32 0.35355338, %v799_v56 }
 0x688   :  { %870 = vrot.lane.b32.xlu1 %v855_v57, %s2031_s18  ;;  %867 = vrot.lane.b32.xlu0 %v855_v57, %s2030_s0  ;;  %v880_v37 = vpack.c.bf16 %v855_v57, %v855_v57 }
 0x68a   :  { %1877 = vrot.lane.b32.xlu2 %v1861_v54, %s2029_s17 }
 0x690   :  { %873 = vrot.lane.b32.xlu0 %v855_v57, %s2029_s17  ;;  %v1913_v57 = vld [vmem:[%s2621_s3 + $0x1] ss:$0 sm:$0xff] }
 0x692   :  { %920 = vrot.lane.b32.xlu2 %v844_v9, %s2029_s17 }
 0x698   :  { %1271 = vrot.lane.b32.xlu0 %v992_v23, %s2032_s19 }
 0x6dc   :  { %v1863_v24 = vpop.permute.xlu2 %1862 }
 0x6dd   :  { %v1865_v2 = vunpack.i.h.bf16 %v1863_v24  ;;  %v1864_v6 = vunpack.i.l.bf16 %v1863_v24 }
 0x6df   :  { %v936_v3 = vpack.c.bf16 %v1865_v2, %v1865_v2  ;;  %v878_v8 = vpack.c.bf16 %v1864_v6, %v1864_v6 }
 0x6e1   :  { %v1110_v9 = vunpack.c.l.b16 %v936_v3  ;;  %1760 = vmatmul.msk.bf16.vlgmr.msrb.gmra.mxu2 %vm183_vm1, %v878_v8 }
 0x6e3   :  { %v2438_v11 = vpack.c.b16 %v1111_v7, %v1110_v9  ;;  %v1916_v7 = vld [vmem:[%s2621_s3 + $0x4] ss:$0 sm:$0xff] }
 0x6e4   :  { %v1878_v12 = vpop.permute.xlu2 %1877 }
 0x6e5   :  { %v1879_v13 = vunpack.i.l.bf16 %v1878_v12  ;;  %v1117_v14 = vsel %vm183_vm1, %v2438_v11, 0  ;;  %v1880_v16 = vunpack.i.h.bf16 %v1878_v12 }
 0x6e6   :  { %1126 = vmatpush.bf16.xpose.msrb.mxu3 %v1117_v14 }
 0x6e7   :  { %v879_v17 = vpack.c.bf16 %v1879_v13, %v1879_v13  ;;  %v938_v18 = vpack.c.bf16 %v1880_v16, %v1880_v16 }
 0x6e9   :  { %1761 = vmatmul.msk.bf16.vlgmr.msra.gmra.mxu0 %vm183_vm1, %v879_v17  ;;  %v1134_v15 = vunpack.c.l.b16 %v938_v18 }
 0x6ec   :  { %v921_v19 = vpop.permute.xlu2 %920 }
 0x6ed   :  { %v939_v20 = vpack.c.bf16 %v921_v19, %v921_v19 }
 0x6ef   :  { %v1135_v22 = vunpack.c.l.b16 %v939_v20 }
 0x6f1   :  { %v2443_v38 = vpack.c.b16 %v1135_v22, %v1134_v15 }
 0x6f2   :  { %v858_v23 = vpop.permute.xlu0 %857 }
 0x6f3   :  { %v877_v25 = vpack.c.bf16 %v858_v23, %v858_v23  ;;  %v1141_v27 = vsel %vm183_vm1, %v2443_v38, 0 }
 0x6f4   :  { %1150 = vmatpush.bf16.xpose.msrb.mxu0 %v1141_v27 }
 0x6f5   :  { %1759 = vmatmul.msk.bf16.vlgmr.msrb.gmra.mxu1 %vm183_vm1, %v877_v25 }
 0x6fa   :  { %v871_v28 = vpop.permute.xlu1 %870  ;;  %v868_v30 = vpop.permute.xlu0 %867 }
 0x6fb   :  { %v882_v26 = vpack.c.bf16 %v871_v28, %v871_v28  ;;  %v881_v32 = vpack.c.bf16 %v868_v30, %v868_v30 }
 0x6fd   :  { %1763 = vmatmul.msk.bf16.vlgmr.msra.gmra.mxu2 %vm183_vm1, %v881_v32  ;;  %1764 = vmatmul.msk.bf16.vlgmr.msrb.gmra.mxu3 %vm183_vm1, %v882_v26 }
 0x6ff   :  { %v984_v34 = vpop.f32.mrf.mxu0 }
 0x700   :  { %v2453_v35 = vadd.f32 %v1910_v33, %v984_v34 }
 0x702   :  { %v874_v36 = vpop.permute.xlu0 %873  ;;  %v1156_v39 = vsel %vm649_vm3, %v2453_v35, -inf }
 0x703   :  { %v883_v42 = vpack.c.bf16 %v874_v36, %v874_v36  ;;  %1157 = vmax.xlane.f32.xlu1 %v1156_v39 }
 0x705   :  { %1762 = vmatmul.msk.bf16.vlgmr.msra.gmra.mxu1 %vm183_vm1, %v880_v37  ;;  %1765 = vmatmul.msk.bf16.vlgmr.msrb.gmra.mxu0 %vm183_vm1, %v883_v42 }
 0x707   :  { %v986_v43 = vpop.f32.mrf.mxu0 }
 0x70a   :  { %v1272_v44 = vpop.permute.xlu0 %1271 }
 0x70b   :  { %1284 = vmatpush.bf16.msrb.mxu2 %v1272_v44 }
 0x764   :  { %v1032_v48 = vpop.f32.mrf.mxu2 }
 0x765   :  { %v1033_v50 = vadd.f32 %v1911_v45, %v1032_v48 }
 0x766   :  { %v1056_v51 = vpop.f32.mrf.mxu0 }
 0x767   :  { %v1057_v52 = vadd.f32 %v1912_v46, %v1056_v51  ;;  %v1162_v53 = vsel %vm649_vm3, %v1033_v50, -inf }
 0x768   :  { %1163 = vmax.xlane.f32.xlu2 %v1162_v53 }
 0x769   :  { %v1165_v54 = vsel %vm649_vm3, %v1057_v52, -inf }
 0x76a   :  { %1166 = vmax.xlane.f32.xlu0 %v1165_v54 }
 0x76c   :  { %v1034_v55 = vpop.f32.mrf.mxu2 }
 0x76e   :  { %v1058_v56 = vpop.f32.mrf.mxu0 }
 0x772   :  { %v1008_v58 = vpop.f32.mrf.mxu1 }
 0x773   :  { %v1009_v41 = vadd.f32 %v1913_v57, %v1008_v58 }
 0x775   :  { %v1159_v59 = vsel %vm649_vm3, %v1009_v41, -inf }
 0x776   :  { %1160 = vmax.xlane.f32.xlu1 %v1159_v59  ;;  %v1158_v28 = vpop.xlane.xlu1 %1157 }
 0x777   :  { %v1180_v58 = vsub.f32 %v2453_v35, %v1158_v28 }
 0x77a   :  { %v1010_v60 = vpop.f32.mrf.mxu1 }
 0x780   :  { %v1104_v1 = vpop.f32.mrf.mxu2  ;;  %v1128_v31 = vpop.f32.mrf.mxu3 }
 0x781   :  { %v1105_v4 = vadd.f32 %v1914_v61, %v1104_v1  ;;  %v1129_v24 = vadd.f32 %v1915_v62, %v1128_v31 }
 0x782   :  { %v1080_v2 = vpop.f32.mrf.mxu1  ;;  %v1152_v6 = vpop.f32.mrf.mxu0 }
 0x783   :  { %v1153_v3 = vadd.f32 %v1917_v63, %v1152_v6  ;;  %v1171_v8 = vsel %vm649_vm3, %v1105_v4, -inf  ;;  %v1174_v9 = vsel %vm649_vm3, %v1129_v24, -inf  ;;  %v2486_v13 = vadd.f32 %v1916_v7, %v1080_v2 }
 0x784   :  { %1172 = vmax.xlane.f32.xlu1 %v1171_v8  ;;  %1175 = vmax.xlane.f32.xlu2 %v1174_v9 }
 0x785   :  { %v1177_v12 = vsel %vm649_vm3, %v1153_v3, -inf  ;;  %v1168_v19 = vsel %vm649_vm3, %v2486_v13, -inf }
 0x786   :  { %1178 = vmax.xlane.f32.xlu0 %v1177_v12 }
 0x788   :  { %v1106_v14 = vpop.f32.mrf.mxu2  ;;  %v1130_v16 = vpop.f32.mrf.mxu3 }
 0x78a   :  { %v1082_v17 = vpop.f32.mrf.mxu1  ;;  %v1154_v18 = vpop.f32.mrf.mxu0 }
 0x78c   :  { %1169 = vmax.xlane.f32.xlu2 %v1168_v19 }
 0x79a   :  { %1309 = vrot.lane.b32.xlu0 %v2420_v47, %s2032_s19 }
 0x79d   :  { %1290 = vrot.lane.b32.xlu1 %v2413_v40, %s2032_s19 }
 0x7db   :  { %v1164_v20 = vpop.xlane.xlu2 %1163 }
 0x7dc   :  { %v1182_v15 = vsub.f32 %v1033_v50, %v1164_v20 }
 0x7dd   :  { %v1167_v22 = vpop.xlane.xlu0 %1166 }
 0x7de   :  { %v1192_v23 = vmul.f32 1.442695, %v1182_v15  ;;  %v1183_v25 = vsub.f32 %v1057_v52, %v1167_v22 }
 0x7e0   :  { %1963 = vpow2.f32 %v1192_v23  ;;  %v1194_v27 = vmul.f32 1.442695, %v1183_v25 }
 0x7e2   :  { %1965 = vpow2.f32 %v1194_v27 }
 0x7e6   :  { %v1964_v30 = vpop.eup %1963 }
 0x7e7   :  { %v1210_v26 = vsel %vm649_vm3, %v1964_v30, 0.0 }
 0x7e8   :  { %v1966_v32 = vpop.eup %1965  ;;  %1211 = vadd.xlane.f32.xlu0 %v1210_v26 }
 0x7e9   :  { %v1161_v33 = vpop.xlane.xlu1 %1160  ;;  %v1213_v47 = vsel %vm649_vm3, %v1966_v32, 0.0 }
 0x7ea   :  { %v1181_v34 = vsub.f32 %v1009_v41, %v1161_v33  ;;  %1214 = vadd.xlane.f32.xlu1 %v1213_v47  ;;  %v1188_v41 = vmul.f32 1.442695, %v1180_v58 }
 0x7ec   :  { %v1190_v40 = vmul.f32 1.442695, %v1181_v34 }
 0x7ee   :  { %1967 = vpow2.f32 %v1190_v40 }
 0x7f4   :  { %v2496_v36 = vpop.eup %1967 }
 0x7f5   :  { %v1207_v39 = vsel %vm649_vm3, %v2496_v36, 0.0 }
 0x7f6   :  { %1208 = vadd.xlane.f32.xlu2 %v1207_v39 }
 0x7f7   :  { %v1176_v37 = vpop.xlane.xlu2 %1175  ;;  %v1173_v48 = vpop.xlane.xlu1 %1172 }
 0x7f8   :  { %v1186_v42 = vsub.f32 %v1129_v24, %v1176_v37  ;;  %v1185_v51 = vsub.f32 %v1105_v4, %v1173_v48 }
 0x7f9   :  { %v1179_v43 = vpop.xlane.xlu0 %1178 }
 0x7fa   :  { %v1200_v44 = vmul.f32 1.442695, %v1186_v42  ;;  %v1187_v45 = vsub.f32 %v1153_v3, %v1179_v43  ;;  %v1198_v53 = vmul.f32 1.442695, %v1185_v51 }
 0x7fc   :  { %1347 = vrot.lane.b32.xlu0 %v2433_v0, %s2032_s19  ;;  %1969 = vpow2.f32 %v1200_v44  ;;  %v1202_v46 = vmul.f32 1.442695, %v1187_v45 }
 0x7fe   :  { %1971 = vpow2.f32 %v1202_v46 }
 0x7ff   :  { %1973 = vpow2.f32 %v1198_v53  ;;  %v1170_v59 = vpop.xlane.xlu2 %1169 }
 0x800   :  { %1975 = vpow2.f32 %v1188_v41  ;;  %v1184_v61 = vsub.f32 %v2486_v13, %v1170_v59 }
 0x802   :  { %v1970_v50 = vpop.eup %1969  ;;  %v1196_v62 = vmul.f32 1.442695, %v1184_v61 }
 0x803   :  { %1366 = vrot.lane.b32.xlu1 %v2438_v11, %s2032_s19  ;;  %v1222_v52 = vsel %vm649_vm3, %v1970_v50, 0.0 }
 0x804   :  { %1223 = vadd.xlane.f32.xlu2 %v1222_v52  ;;  %v1972_v54 = vpop.eup %1971  ;;  %1977 = vpow2.f32 %v1196_v62 }
 0x805   :  { %v1225_v0 = vsel %vm649_vm3, %v1972_v54, 0.0  ;;  %v1974_v57 = vpop.eup %1973 }
 0x806   :  { %v1219_v11 = vsel %vm649_vm3, %v1974_v57, 0.0  ;;  %v1976_v60 = vpop.eup %1975 }
 0x80a   :  { %v2514_v63 = vpop.eup %1977 }
 0x80b   :  { %1252 = vrot.lane.b32.xlu1 %v2387_v49, %s2032_s19  ;;  %v1204_v49 = vsel %vm649_vm3, %v1976_v60, 0.0  ;;  %v1216_v35 = vsel %vm649_vm3, %v2514_v63, 0.0 }
 0x80c   :  { %v1310_v55 = vpop.permute.xlu0 %1309  ;;  %1226 = vadd.xlane.f32.xlu2 %v1225_v0 }
 0x80d   :  { %1322 = vmatpush.bf16.msra.mxu0 %v1310_v55 }
 0x80f   :  { %v1291_v56 = vpop.permute.xlu1 %1290 }
 0x810   :  { %1303 = vmatpush.bf16.msra.mxu3 %v1291_v56 }
 0x814   :  { %1220 = vadd.xlane.f32.xlu2 %v1219_v11 }
 0x826   :  { %1205 = vadd.xlane.f32.xlu0 %v1204_v49 }
 0x82c   :  { %1385 = vrot.lane.b32.xlu2 %v2443_v38, %s2032_s19 }
 0x834   :  { %1328 = vrot.lane.b32.xlu2 %v2408_v21, %s2032_s19 }
 0x835   :  { %1217 = vadd.xlane.f32.xlu1 %v1216_v35 }
 0x85b   :  { %v1212_v1 = vpop.xlane.xlu0 %1211 }
 0x85c   :  { %1979 = vrcp.f32 %v1212_v1 }
 0x85d   :  { %v1215_v31 = vpop.xlane.xlu1 %1214 }
 0x85e   :  { %1981 = vrcp.f32 %v1215_v31 }
 0x862   :  { %v1980_v4 = vpop.eup %1979 }
 0x863   :  { %v1238_v24 = vmul.f32 %v1980_v4, %v1964_v30 }
 0x864   :  { %v1982_v2 = vpop.eup %1981 }
 0x865   :  { %v1246_v6 = vpack.c.bf16 %v1238_v24, %v1238_v24  ;;  %v1239_v7 = vmul.f32 %v1982_v2, %v1966_v32  ;;  %v1817_v2 = vld [vmem:[%s2626_s8] sm:$0xff] }
 0x867   :  { %v1247_v3 = vpack.c.bf16 %v1239_v7, %v1239_v7  ;;  %1768 = vmatmul.msk.bf16.vlgmr.msra.gmra.mxu3 %vm649_vm3, %v1246_v6 }
 0x869   :  { %1769 = vmatmul.msk.bf16.vlgmr.msra.gmra.mxu0 %vm649_vm3, %v1247_v3  ;;  %v1209_v38 = vpop.xlane.xlu2 %1208 }
 0x86a   :  { %1983 = vrcp.f32 %v1209_v38 }
 0x86e   :  { %v1348_v8 = vpop.permute.xlu0 %1347 }
 0x86f   :  { %1360 = vmatpush.bf16.msra.mxu2 %v1348_v8 }
 0x870   :  { %v1984_v21 = vpop.eup %1983 }
 0x871   :  { %v1237_v9 = vmul.f32 %v1984_v21, %v2496_v36 }
 0x873   :  { %v1245_v12 = vpack.c.bf16 %v1237_v9, %v1237_v9 }
 0x875   :  { %v1367_v13 = vpop.permute.xlu1 %1366  ;;  %1767 = vmatmul.msk.bf16.vlgmr.msrb.gmra.mxu2 %vm649_vm3, %v1245_v12 }
 0x876   :  { %1379 = vmatpush.bf16.msrb.mxu3 %v1367_v13 }
 0x877   :  { %v1224_v14 = vpop.xlane.xlu2 %1223 }
 0x878   :  { %1985 = vrcp.f32 %v1224_v14 }
 0x87d   :  { %v1253_v16 = vpop.permute.xlu1 %1252 }
 0x87e   :  { %1265 = vmatpush.bf16.msrb.mxu1 %v1253_v16  ;;  %v1986_v17 = vpop.eup %1985 }
 0x87f   :  { %v1242_v18 = vmul.f32 %v1986_v17, %v1970_v50  ;;  %v1227_v19 = vpop.xlane.xlu2 %1226 }
 0x880   :  { %1987 = vrcp.f32 %v1227_v19 }
 0x881   :  { %v1250_v20 = vpack.c.bf16 %v1242_v18, %v1242_v18 }
 0x883   :  { %1772 = vmatmul.msk.bf16.vlgmr.msrb.gmra.mxu3 %vm649_vm3, %v1250_v20 }
 0x886   :  { %v1988_v22 = vpop.eup %1987 }
 0x887   :  { %v1221_v15 = vpop.xlane.xlu2 %1220  ;;  %v1243_v23 = vmul.f32 %v1988_v22, %v1972_v54  ;;  %v1918_v22 = vld [vmem:[%s2629_s11 + $0x4] ss:$0 sm:$0xff] }
 0x888   :  { %1989 = vrcp.f32 %v1221_v15 }
 0x889   :  { %v1251_v30 = vpack.c.bf16 %v1243_v23, %v1243_v23 }
 0x88e   :  { %v1990_v25 = vpop.eup %1989 }
 0x88f   :  { %v1241_v27 = vmul.f32 %v1990_v25, %v1974_v57  ;;  %v1386_v28 = vpop.permute.xlu2 %1385 }
 0x890   :  { %1398 = vmatpush.bf16.msrb.mxu0 %v1386_v28 }
 0x891   :  { %v1249_v26 = vpack.c.bf16 %v1241_v27, %v1241_v27 }
 0x893   :  { %1771 = vmatmul.msk.bf16.vlgmr.msra.gmra.mxu2 %vm649_vm3, %v1249_v26  ;;  %1773 = vmatmul.msk.bf16.vlgmr.msrb.gmra.mxu0 %vm649_vm3, %v1251_v30 }
 0x897   :  { %v1329_v32 = vpop.permute.xlu2 %1328 }
 0x898   :  { %1341 = vmatpush.bf16.msra.mxu1 %v1329_v32 }
 0x899   :  { %v1206_v33 = vpop.xlane.xlu0 %1205 }
 0x89a   :  { %1991 = vrcp.f32 %v1206_v33 }
 0x8a0   :  { %v1992_v47 = vpop.eup %1991 }
 0x8a1   :  { %v1236_v34 = vmul.f32 %v1992_v47, %v1976_v60 }
 0x8a3   :  { %v1244_v40 = vpack.c.bf16 %v1236_v34, %v1236_v34  ;;  %v1435_v36 = vadd.f32 %v1237_v9, %v1236_v34 }
 0x8a5   :  { %v1436_v39 = vadd.f32 %v1435_v36, %v1238_v24  ;;  %1766 = vmatmul.msk.bf16.vlgmr.msrb.gmra.mxu1 %vm649_vm3, %v1244_v40  ;;  %v1818_v24 = vld [vmem:[%s2626_s8 + $0x8] sm:$0xff]  ;;  %s2039_s8 = smov 128  }
 0x8a6   :  { %1472 = vmatpush.bf16.msrb.mxu1 %v1818_v24 }
 0x8a7   :  { %v1437_v37 = vadd.f32 %v1436_v39, %v1239_v7 }
 0x8a8   :  { %v1218_v42 = vpop.xlane.xlu1 %1217 }
 0x8a9   :  { %1993 = vrcp.f32 %v1218_v42  ;;  %v1438_v43 = vmul.f32 0.25, %v1437_v37 }
 0x8aa   :  { %1473 = vmatpush.bf16.msrb.mxu1 %v1817_v2 }
 0x8ab   :  { %1681 = vst.msk [vmem:[#allocation2] sm:$0xff] %vm649_vm3, %v1438_v43 }
 0x8af   :  { %v1994_v44 = vpop.eup %1993 }
 0x8b0   :  { %v1240_v45 = vmul.f32 %v1994_v44, %v2514_v63 }
 0x8b2   :  { %v1248_v46 = vpack.c.bf16 %v1240_v45, %v1240_v45  ;;  %v1440_v48 = vadd.f32 %v1241_v27, %v1240_v45 }
 0x8b4   :  { %v1441_v50 = vadd.f32 %v1440_v48, %v1242_v18  ;;  %v1819_v48 = vld [vmem:[%s2627_s9] sm:$0xff] }
 0x8b5   :  { %1770 = vmatmul.msk.bf16.vlgmr.msra.gmra.mxu1 %vm649_vm3, %v1248_v46 }
 0x8b6   :  { %v1442_v51 = vadd.f32 %v1441_v50, %v1243_v23 }
 0x8b8   :  { %v1443_v52 = vmul.f32 0.25, %v1442_v51 }
 0x8ba   :  { %1682 = vst.msk [vmem:[#allocation2 + $0x8] sm:$0xff] %vm649_vm3, %v1443_v52 }
 0x8e6   :  { %v1324_v53 = vpop.f32.mrf.mxu0 }
 0x8ea   :  { %v1305_v54 = vpop.f32.mrf.mxu3 }
 0x8ee   :  { %v1326_v55 = vpop.f32.mrf.mxu0 }
 0x8f2   :  { %v1307_v0 = vpop.f32.mrf.mxu3 }
 0x8f8   :  { %v1286_v56 = vpop.f32.mrf.mxu2 }
 0x900   :  { %v1288_v57 = vpop.f32.mrf.mxu2 }
 0x906   :  { %v1381_v58 = vpop.f32.mrf.mxu3 }
 0x907   :  { %v1886_v63 = vpack.i.bf16 %v1381_v58, %v1305_v54 }
 0x90e   :  { %v1383_v11 = vpop.f32.mrf.mxu3 }
 0x910   :  { %v1400_v41 = vpop.f32.mrf.mxu0 }
 0x911   :  { %v1891_v59 = vpack.i.bf16 %v1400_v41, %v1324_v53 }
 0x913   :  { %1892 = vrot.lane.b32.xlu0 %v1891_v59, %s2036_s23  ;;  %s1691_s23 = sshll.u32 %s2631_s13, 4  ;;  %s1692_s23 = int_to_ptr.hbm [resolvable:$true] %s1691_s23 }
 0x916   :  { %v1362_v60 = vpop.f32.mrf.mxu2 }
 0x917   :  { %v1881_v61 = vpack.i.bf16 %v1362_v60, %v1286_v56 }
 0x918   :  { %v1402_v49 = vpop.f32.mrf.mxu0 }
 0x919   :  { %1882 = vrot.lane.b32.xlu2 %v1881_v61, %s2034_s2 }
 0x91e   :  { %v1364_v62 = vpop.f32.mrf.mxu2 }
 0x91f   :  { %v1919_v62 = vld [vmem:[%s2629_s11 + $0x9] ss:$0 sm:$0xff] }
 0x921   :  { %1887 = vrot.lane.b32.xlu2 %v1886_v63, %s2035_s22 }
 0x922   :  { %v1267_v35 = vpop.f32.mrf.mxu1 }
 0x92a   :  { %v1269_v1 = vpop.f32.mrf.mxu1 }
 0x932   :  { %v1343_v31 = vpop.f32.mrf.mxu1 }
 0x93a   :  { %v1345_v4 = vpop.f32.mrf.mxu1 }
 0x973   :  { %v1883_v6 = vpop.permute.xlu2 %1882 }
 0x974   :  { %v1885_v3 = vunpack.i.h.bf16 %v1883_v6  ;;  %v1884_v38 = vunpack.i.l.bf16 %v1883_v6 }
 0x976   :  { %v1431_v12 = vsel %vm183_vm1, %v1343_v31, %v1885_v3  ;;  %v1416_v13 = vsel %vm183_vm1, %v1267_v35, %v1884_v38  ;;  %v1920_v31 = vld [vmem:[%s2629_s11 + $0xa] ss:$0 sm:$0xff]  ;;  %v1824_v38 = vld [vmem:[%s2628_s10 + $0x18] sm:$0xff] }
 0x977   :  { %1615 = vmatpush.bf16.msra.mxu3 %v1824_v38 }
 0x97b   :  { %v1888_v7 = vpop.permute.xlu2 %1887 }
 0x97c   :  { %v1890_v8 = vunpack.i.h.bf16 %v1888_v7  ;;  %v1889_v21 = vunpack.i.l.bf16 %v1888_v7 }
 0x97e   :  { %v1417_v17 = vsel %vm649_vm3, %v1416_v13, %v1889_v21  ;;  %v1432_v18 = vsel %vm649_vm3, %v1431_v12, %v1890_v8  ;;  %v1823_v8 = vld [vmem:[%s2628_s10 + $0x10] sm:$0xff]  ;;  %v1822_v21 = vld [vmem:[%s2628_s10 + $0x8] sm:$0xff]  ;;  %v1921_v13 = vld [vmem:[%s2629_s11 + $0x5] ss:$0 sm:$0xff]  ;;  %vm1607_vm3 = vcmask 523264  }
 0x97f   :  { %1616 = vmatpush.bf16.msra.mxu3 %v1823_v8 }
 0x983   :  { %1617 = vmatpush.bf16.msra.mxu3 %v1822_v21 }
 0x985   :  { %v1893_v9 = vpop.permute.xlu0 %1892 }
 0x986   :  { %v1895_v14 = vunpack.i.h.bf16 %v1893_v9  ;;  %v1894_v16 = vunpack.i.l.bf16 %v1893_v9  ;;  %v1821_v9 = vld [vmem:[%s2628_s10] sm:$0xff]  ;;  %s2038_s10 = smov [#allocation2]  }
 0x987   :  { %1618 = vmatpush.bf16.msra.mxu3 %v1821_v9  ;;  %s1689_s3 = sshll.u32 %s2038_s10, 4  ;;  %s1690_s3 = int_to_ptr.vmem [resolvable:$true] %s1689_s3 }
 0x988   :  { %v1418_v19 = vsel %vm651_vm4, %v1417_v17, %v1894_v16  ;;  %v1433_v20 = vsel %vm651_vm4, %v1432_v18, %v1895_v14  ;;  %1697 = dma.vmem_to_hbm [thread:$0]  %s1690_s3, 256, %s1692_s23, [#allocation3], %s2039_s8, %s2039_s8, %s2034_s2  }
 0x989   :  { %v1445_v15 = vpack.c.bf16 %v1433_v20, %v1418_v19 }
 0x98b   :  { %1782 = vmatmul.msk.bf16.vlgmr.msrb.gmra.mxu1 %vm70_vm0, %v1445_v15  ;;  %v1922_v15 = vld [vmem:[%s2629_s11 + $0x6] ss:$0 sm:$0xff] }
 0xa08   :  { %v1475_v23 = vpop.f32.mrf.mxu1 }
 0xa09   :  { %v1476_v25 = vadd.f32 %v1918_v22, %v1475_v23 }
 0xa0b   :  { %v1482_v27 = vadd.f32 %v1476_v25, %v2399_v5 }
 0xa0d   :  { %v1484_v28 = vsel %vm70_vm0, %v1482_v27, 0.0 }
 0xa0e   :  { %1485 = vadd.xlane.f32.xlu2 %v1484_v28 }
 0xa10   :  { %v1477_v30 = vpop.f32.mrf.mxu1 }
 0xa11   :  { %v1478_v26 = vadd.f32 %v1918_v22, %v1477_v30 }
 0xa13   :  { %v1483_v32 = vadd.f32 %v1478_v26, %v2401_v29  ;;  %v1820_v29 = vld [vmem:[%s2627_s9 + $0x8] sm:$0xff] }
 0xa14   :  { %1562 = vmatpush.bf16.msrb.mxu2 %v1820_v29 }
 0xa15   :  { %v1487_v33 = vsel %vm70_vm0, %v1483_v32, 0.0 }
 0xa16   :  { %1488 = vadd.xlane.f32.xlu1 %v1487_v33 }
 0xa18   :  { %1563 = vmatpush.bf16.msrb.mxu2 %v1819_v48 }
 0xa81   :  { %v1486_v47 = vpop.xlane.xlu2 %1485 }
 0xa82   :  { %v1490_v34 = vmul.f32 %v1486_v47, %v2362_v10 }
 0xa84   :  { %v1492_v40 = vsub.f32 %v1482_v27, %v1490_v34 }
 0xa86   :  { %v1494_v36 = vmul.f32 %v1492_v40, %v1492_v40 }
 0xa88   :  { %v1496_v39 = vsel %vm70_vm0, %v1494_v36, 0.0 }
 0xa89   :  { %v1489_v37 = vpop.xlane.xlu1 %1488  ;;  %1497 = vadd.xlane.f32.xlu1 %v1496_v39 }
 0xa8a   :  { %v1491_v5 = vmul.f32 %v1489_v37, %v2362_v10 }
 0xa8c   :  { %v1493_v42 = vsub.f32 %v1483_v32, %v1491_v5 }
 0xa8e   :  { %v1495_v43 = vmul.f32 %v1493_v42, %v1493_v42 }
 0xa90   :  { %v1499_v44 = vsel %vm70_vm0, %v1495_v43, 0.0 }
 0xa91   :  { %1500 = vadd.xlane.f32.xlu0 %v1499_v44 }
 0xafc   :  { %v1498_v45 = vpop.xlane.xlu1 %1497 }
 0xafd   :  { %v1502_v46 = vmul.f32 %v1498_v45, %v2362_v10 }
 0xaff   :  { %v1504_v50 = vadd.f32 1e-05, %v1502_v46 }
 0xb01   :  { %1995 = vrsqrt.f32 %v1504_v50  ;;  %vm1512_vm13 = vweird.f32 %v1504_v50 }
 0xb04   :  { %v1501_v51 = vpop.xlane.xlu0 %1500 }
 0xb05   :  { %v1503_v52 = vmul.f32 %v1501_v51, %v2362_v10 }
 0xb07   :  { %v1996_v53 = vpop.eup %1995  ;;  %v1505_v54 = vadd.f32 1e-05, %v1503_v52 }
 0xb08   :  { %v1507_v55 = vmul.f32 %v1996_v53, %v1504_v50  ;;  %vm1513_vm12 = vweird.f32 %v1996_v53 }
 0xb09   :  { %1997 = vrsqrt.f32 %v1505_v54  ;;  %vm1514_vm14 = vmor %vm1512_vm13, %vm1513_vm12  ;;  %vm1522_vm1 = vweird.f32 %v1505_v54 }
 0xb0a   :  { %v1508_v0 = vmul.f32 %v1996_v53, %v1507_v55 }
 0xb0c   :  { %v1509_v56 = vmul.f32 0.5, %v1508_v0 }
 0xb0e   :  { %v1510_v57 = vsub.f32 1.5, %v1509_v56 }
 0xb0f   :  { %v1998_v58 = vpop.eup %1997 }
 0xb10   :  { %v1511_v11 = vmul.f32 %v1996_v53, %v1510_v57  ;;  %v1517_v41 = vmul.f32 %v1998_v58, %v1505_v54  ;;  %vm1523_vm15 = vweird.f32 %v1998_v58 }
 0xb11   :  { %vm1524_vm2 = vmor %vm1522_vm1, %vm1523_vm15 }
 0xb12   :  { %v1518_v59 = vmul.f32 %v1998_v58, %v1517_v41  ;;  %v1515_v60 = vsel %vm1514_vm14, %v1996_v53, %v1511_v11 }
 0xb13   :  { %v1526_v63 = vmul.f32 %v1515_v60, %v1492_v40 }
 0xb14   :  { %v1519_v61 = vmul.f32 0.5, %v1518_v59 }
 0xb15   :  { %v1529_v4 = vmul.f32 %v1919_v62, %v1526_v63 }
 0xb16   :  { %v1520_v49 = vsub.f32 1.5, %v1519_v61 }
 0xb17   :  { %v1532_v6 = vadd.f32 %v1920_v31, %v1529_v4 }
 0xb18   :  { %v1521_v35 = vmul.f32 %v1998_v58, %v1520_v49 }
 0xb1a   :  { %v1525_v1 = vsel %vm1524_vm2, %v1998_v58, %v1521_v35  ;;  %v1923_v58 = vld [vmem:[%s2629_s11 + $0xb] ss:$0 sm:$0xff] }
 0xb1b   :  { %v1527_v24 = vmul.f32 %v1525_v1, %v1493_v42 }
 0xb1d   :  { %v1530_v2 = vmul.f32 %v1919_v62, %v1527_v24 }
 0xb1f   :  { %v1533_v7 = vadd.f32 %v1920_v31, %v1530_v2 }
 0xb21   :  { %v1535_v3 = vpack.c.bf16 %v1533_v7, %v1532_v6 }
 0xb23   :  { %1791 = vmatmul.msk.bf16.vlgmr.msrb.gmra.mxu2 %vm70_vm0, %v1535_v3 }
 0xba6   :  { %v1565_v12 = vpop.f32.mrf.mxu2 }
 0xba7   :  { %v1566_v14 = vadd.f32 %v1921_v13, %v1565_v12 }
 0xba9   :  { %v1570_v18 = vmax.f32 %v1566_v14, 0.0 }
 0xbae   :  { %v1567_v16 = vpop.f32.mrf.mxu2 }
 0xbaf   :  { %v1568_v17 = vadd.f32 %v1921_v13, %v1567_v16 }
 0xbb1   :  { %v1571_v19 = vmax.f32 %v1568_v17, 0.0 }
 0xbb3   :  { %v1573_v20 = vpack.c.bf16 %v1571_v19, %v1570_v18 }
 0xbb5   :  { %1808 = vmatmul.msk.bf16.vlgmr.msra.gmra.mxu3 %vm1607_vm3, %v1573_v20 }
 0xc38   :  { %v1620_v22 = vpop.f32.mrf.mxu3 }
 0xc39   :  { %v1621_v23 = vadd.f32 %v1922_v15, %v1620_v22 }
 0xc3b   :  { %v1627_v25 = vadd.f32 %v1621_v23, %v1532_v6 }
 0xc3d   :  { %v1629_v27 = vsel %vm70_vm0, %v1627_v25, 0.0 }
 0xc3e   :  { %1630 = vadd.xlane.f32.xlu1 %v1629_v27 }
 0xc40   :  { %v1622_v28 = vpop.f32.mrf.mxu3 }
 0xc41   :  { %v1623_v30 = vadd.f32 %v1922_v15, %v1622_v28 }
 0xc43   :  { %v1628_v26 = vadd.f32 %v1623_v30, %v1533_v7 }
 0xc45   :  { %v1632_v32 = vsel %vm70_vm0, %v1628_v26, 0.0 }
 0xc46   :  { %1633 = vadd.xlane.f32.xlu1 %v1632_v32 }
 0xcb1   :  { %v1631_v33 = vpop.xlane.xlu1 %1630 }
 0xcb2   :  { %v1635_v47 = vmul.f32 %v1631_v33, %v2362_v10 }
 0xcb4   :  { %v1637_v34 = vsub.f32 %v1627_v25, %v1635_v47 }
 0xcb6   :  { %v1639_v40 = vmul.f32 %v1637_v34, %v1637_v34 }
 0xcb8   :  { %v1641_v36 = vsel %vm70_vm0, %v1639_v40, 0.0 }
 0xcb9   :  { %1642 = vadd.xlane.f32.xlu2 %v1641_v36  ;;  %v1634_v39 = vpop.xlane.xlu1 %1633 }
 0xcba   :  { %v1636_v37 = vmul.f32 %v1634_v39, %v2362_v10 }
 0xcbc   :  { %v1638_v5 = vsub.f32 %v1628_v26, %v1636_v37 }
 0xcbe   :  { %v1640_v42 = vmul.f32 %v1638_v5, %v1638_v5 }
 0xcc0   :  { %v1644_v43 = vsel %vm70_vm0, %v1640_v42, 0.0 }
 0xcc1   :  { %1645 = vadd.xlane.f32.xlu1 %v1644_v43 }
 0xd2c   :  { %v1643_v44 = vpop.xlane.xlu2 %1642 }
 0xd2d   :  { %v1647_v29 = vmul.f32 %v1643_v44, %v2362_v10 }
 0xd2f   :  { %v1649_v45 = vadd.f32 1e-05, %v1647_v29 }
 0xd31   :  { %1999 = vrsqrt.f32 %v1649_v45  ;;  %vm1657_vm5 = vweird.f32 %v1649_v45 }
 0xd34   :  { %v1646_v46 = vpop.xlane.xlu1 %1645 }
 0xd35   :  { %v1648_v48 = vmul.f32 %v1646_v46, %v2362_v10  ;;  %v1924_v10 = vld [vmem:[%s2629_s11 + $0xc] ss:$0 sm:$0xff] }
 0xd37   :  { %v2000_v50 = vpop.eup %1999  ;;  %v1650_v51 = vadd.f32 1e-05, %v1648_v48 }
 0xd38   :  { %v1652_v52 = vmul.f32 %v2000_v50, %v1649_v45  ;;  %vm1658_vm4 = vweird.f32 %v2000_v50 }
 0xd39   :  { %2001 = vrsqrt.f32 %v1650_v51  ;;  %vm1659_vm6 = vmor %vm1657_vm5, %vm1658_vm4  ;;  %vm1667_vm8 = vweird.f32 %v1650_v51 }
 0xd3a   :  { %v1653_v53 = vmul.f32 %v2000_v50, %v1652_v52 }
 0xd3c   :  { %v1654_v54 = vmul.f32 0.5, %v1653_v53 }
 0xd3e   :  { %v1655_v55 = vsub.f32 1.5, %v1654_v54 }
 0xd3f   :  { %v2002_v0 = vpop.eup %2001 }
 0xd40   :  { %v1656_v56 = vmul.f32 %v2000_v50, %v1655_v55  ;;  %v1662_v57 = vmul.f32 %v2002_v0, %v1650_v51  ;;  %vm1668_vm7 = vweird.f32 %v2002_v0 }
 0xd41   :  { %vm1669_vm9 = vmor %vm1667_vm8, %vm1668_vm7 }
 0xd42   :  { %v1660_v11 = vsel %vm1659_vm6, %v2000_v50, %v1656_v56  ;;  %v1663_v41 = vmul.f32 %v2002_v0, %v1662_v57 }
 0xd43   :  { %v1671_v59 = vmul.f32 %v1660_v11, %v1637_v34 }
 0xd44   :  { %v1664_v60 = vmul.f32 0.5, %v1663_v41 }
 0xd45   :  { %v1674_v61 = vmul.f32 %v1923_v58, %v1671_v59 }
 0xd46   :  { %v1665_v49 = vsub.f32 1.5, %v1664_v60 }
 0xd47   :  { %v1677_v62 = vadd.f32 %v1924_v10, %v1674_v61 }
 0xd48   :  { %v1666_v63 = vmul.f32 %v2002_v0, %v1665_v49 }
 0xd49   :  { %1679 = vst.msk [vmem:[%s2630_s12] sm:$0xff] %vm70_vm0, %v1677_v62 }
 0xd4a   :  { %v1670_v35 = vsel %vm1669_vm9, %v2002_v0, %v1666_v63 }
 0xd4b   :  { %v1672_v1 = vmul.f32 %v1670_v35, %v1638_v5 }
 0xd4d   :  { %v1675_v31 = vmul.f32 %v1923_v58, %v1672_v1 }
 0xd4f   :  { %v1678_v4 = vadd.f32 %v1924_v10, %v1675_v31 }
 0xd51   :  { %1680 = vst.msk [vmem:[%s2630_s12 + $0x8] sm:$0xff] %vm70_vm0, %v1678_v4 }
 0xd52   :  { %2027 = dma.done.wait [#allocation3], 256  }
 0xd53   :  { %2028 = vsyncadd [#allocation3], 4294967040 }
 0xd54   :  { %1704 = vsyncpa [#allocation3], 1 }

</bundles_post_ra>
